<compile_context>
chip_gen: v6e
topology: v6e:2x2x1
jax: 0.10.0
libtpu: 0.0.40
codegen_flags: <defaults>
</compile_context>

<pallas_src>
import math

import jax
import jax.numpy as jnp
from jax.experimental import pallas as pl
from jax.experimental.pallas import tpu as pltpu

_CLAMP_MAX = 1000.0           # self.clamp_max
_LOSS_HEIGHT_WEIGHT = 10.0    # self.loss_height_weight
_MERC_R = 20037508.3427892

# SMEM parameter vector layout
#   [0:8]   hi, lo, t, 1/n, 1/(n-1), 1/t, n, 0
#   [8:18]  LAT_OFF, 1/LAT_SCALE, LON_OFF, 1/LON_SCALE, H_OFF, 1/H_SCALE,
#           SAMP_OFF, SAMP_SCALE, LINE_OFF, LINE_SCALE
#   [18:24] padding
#   [24:104] RPC coefficients, rows [SAMP_NUM, SAMP_DEN, LINE_NUM, LINE_DEN] x 20
_PAR_NORM = 8
_PAR_COEF = 24
_PAR_LEN = 104


def _batched_sums(xs):
    """Full-sum each (R,128) array to a (1,1) scalar, sharing one cross-lane reduce.

    Each input is first sublane-reduced to a (1,128) per-lane partial (so the full
    (R,128) product dies immediately), the partials are stacked into one tile and a
    single XLU cross-lane reduce is issued for the whole group (<= 8 quantities).
    """
    parts = [jnp.sum(x, axis=0, keepdims=True) for x in xs]       # each (1, 128)
    stacked = parts[0] if len(parts) == 1 else jnp.concatenate(parts, axis=0)
    totals = jnp.sum(stacked, axis=1, keepdims=True)              # (k, 1)
    return [totals[i:i + 1, 0:1] for i in range(len(xs))]         # each (1, 1)


def _criterion_kernel(data_ref, par_ref, out_ref):
    f32 = jnp.float32
    # ---- scalar parameters (SMEM) ----
    hi = par_ref[0]           # 0.5 + progress * 0.4
    lo = par_ref[1]           # 0.5 - progress * 0.4
    t = par_ref[2]            # tanh-clamp scale
    inv_n = par_ref[3]        # 1 / n_points
    inv_nm1 = par_ref[4]      # 1 / (n_points - 1)
    inv_t = par_ref[5]        # 1 / t
    n_f = par_ref[6]          # n_points (as float)

    r_blocks = data_ref.shape[1]

    # ---- validity mask rebuilt in-kernel (no mask channel in the packed input) ----
    ridx = jax.lax.broadcasted_iota(jnp.int32, (r_blocks, 128), 0)
    lidx = jax.lax.broadcasted_iota(jnp.int32, (r_blocks, 128), 1)
    pidx = (ridx * 128 + lidx).astype(f32)
    mask = (pidx < n_f).astype(f32)                       # 1.0 real point, 0.0 padding

    # ---- RPC_OBJ2PHOTO: one fused pass over the 20 monomials ----
    # lon is linear in easting; lat (needs arctan) arrives pre-computed in channel 8.
    lat = data_ref[8]
    lon = data_ref[1] * (180.0 / _MERC_R)
    P = (lat - par_ref[_PAR_NORM + 0]) * par_ref[_PAR_NORM + 1]
    L = (lon - par_ref[_PAR_NORM + 2]) * par_ref[_PAR_NORM + 3]
    H = (data_ref[2] - par_ref[_PAR_NORM + 4]) * par_ref[_PAR_NORM + 5]

    base = _PAR_COEF
    accs = (jnp.full_like(P, par_ref[base + 0]),          # samp numerator
            jnp.full_like(P, par_ref[base + 20]),         # samp denominator
            jnp.full_like(P, par_ref[base + 40]),         # line numerator
            jnp.full_like(P, par_ref[base + 60]))         # line denominator

    def _fma(j, term, accs):
        sn, sd, ln, ld = accs
        return (sn + par_ref[base + j] * term,
                sd + par_ref[base + 20 + j] * term,
                ln + par_ref[base + 40 + j] * term,
                ld + par_ref[base + 60 + j] * term)

    accs = _fma(1, L, accs)
    accs = _fma(2, P, accs)
    accs = _fma(3, H, accs)
    LP = L * P
    accs = _fma(4, LP, accs)
    accs = _fma(5, L * H, accs)
    accs = _fma(6, P * H, accs)
    accs = _fma(10, LP * H, accs)                         # P*L*H
    LL = L * L
    PP = P * P
    HH = H * H
    accs = _fma(7, LL, accs)
    accs = _fma(8, PP, accs)
    accs = _fma(9, HH, accs)
    accs = _fma(11, LL * L, accs)
    accs = _fma(12, L * PP, accs)
    accs = _fma(13, L * HH, accs)
    accs = _fma(14, LL * P, accs)
    accs = _fma(15, PP * P, accs)
    accs = _fma(16, P * HH, accs)
    accs = _fma(17, LL * H, accs)
    accs = _fma(18, PP * H, accs)
    accs = _fma(19, HH * H, accs)
    samp_num, samp_den, line_num, line_den = accs

    # EUP approx reciprocal + one Newton step (~f32-exact), off the VALU divide path.
    inv_sd = pl.reciprocal(samp_den, approx=True)
    inv_sd = inv_sd * (2.0 - samp_den * inv_sd)
    inv_ld = pl.reciprocal(line_den, approx=True)
    inv_ld = inv_ld * (2.0 - line_den * inv_ld)
    lp_samp = samp_num * inv_sd * par_ref[_PAR_NORM + 7] + par_ref[_PAR_NORM + 6]
    lp_line = line_num * inv_ld * par_ref[_PAR_NORM + 9] + par_ref[_PAR_NORM + 8]

    # ---- reduction group 1: conf mean + local/pred means ----
    conf_raw = data_ref[9]
    conf1 = jnp.where(conf_raw > 0.5, hi, conf_raw)       # sequential in-place torch edits
    conf2 = jnp.where(conf1 < 0.5, lo, conf1)
    lg_line = data_ref[6]
    lg_samp = data_ref[7]
    s_conf, s_ll, s_ls, s_pl, s_ps = _batched_sums(
        [conf2 * mask, lg_line * mask, lg_samp * mask, lp_line * mask, lp_samp * mask])
    conf_mean = s_conf * inv_n
    ml_line = s_ll * inv_n
    ml_samp = s_ls * inv_n
    mp_line = s_pl * inv_n
    mp_samp = s_ps * inv_n

    # ---- confidence schedule + point-wise losses ----
    conf = jnp.maximum(conf2 - conf_mean + 1.0, 0.0) * mask      # pads -> 0
    d_line = lp_line - lg_line
    d_samp = lp_samp - lg_samp
    bias_line = t * jnp.tanh(d_line * inv_t)
    bias_samp = t * jnp.tanh(d_samp * inv_t)
    photo_norm = jnp.sqrt(d_line * d_line + d_samp * d_samp)
    obj_norm = jnp.sqrt((data_ref[0] - data_ref[3]) ** 2 + (data_ref[1] - data_ref[4]) ** 2)

    dl = lg_line + (mp_line - ml_line) - lp_line
    dsm = lg_samp + (mp_samp - ml_samp) - lp_samp
    dis = jnp.sqrt(dl * dl + dsm * dsm)

    # ---- reduction group 2: all conf-weighted loss sums + dis moments ----
    s_obj, s_h, s_photo, s_bl, s_bs, s_dis, s_dis2 = _batched_sums([
        obj_norm * conf,
        jnp.abs(data_ref[2] - data_ref[5]) * conf,
        t * jnp.tanh(photo_norm * inv_t) * conf,
        bias_line * conf,
        bias_samp * conf,
        dis * mask,
        dis * dis * mask,
    ])
    loss_obj = s_obj * inv_n
    loss_height = s_h * inv_n
    loss_photo = s_photo * inv_n
    loss_bias = jnp.sqrt((s_bl * inv_n) ** 2 + (s_bs * inv_n) ** 2)

    dis_mean = s_dis * inv_n
    # one-pass unbiased variance (clamped): sum((dis-m)^2) = sum(dis^2) - m*sum(dis)
    dis_std = jnp.sqrt(jnp.maximum(s_dis2 - dis_mean * s_dis, 0.0) * inv_nm1)

    # ---- affine_loss: masked, centered least-squares fit (local -> pred) ----
    valid = jnp.logical_and(conf > 0.5, dis < dis_mean + dis_std)
    vm = valid.astype(f32)                                # pads already have conf == 0
    u = data_ref[6]                                       # re-read: one vld, no long live range
    v = data_ref[7]

    # ---- reduction group 3: valid count + valid-set means ----
    cnt, s_u, s_v, s_plv, s_psv = _batched_sums(
        [vm, u * vm, v * vm, lp_line * vm, lp_samp * vm])
    inv_cnt = 1.0 / jnp.maximum(cnt, 1.0)                 # guard: torch.inverse would raise
    um = s_u * inv_cnt
    vmn = s_v * inv_cnt
    pl_m = s_plv * inv_cnt
    ps_m = s_psv * inv_cnt

    # Center basis/targets by their valid-point means: identical LS prediction, but
    # X^T X stays well conditioned in f32 (raw pixel coordinates are ~1e3).
    uc = u - um
    vc = v - vmn
    yl = lp_line - pl_m
    ys = lp_samp - ps_m

    # ---- reduction groups 4/5: Gram matrix + RHS of the normal equations ----
    a11, a12, a13, a22, a23, b11, b12, b21 = _batched_sums([
        uc * uc * vm, uc * vc * vm, uc * vm, vc * vc * vm, vc * vm,
        uc * yl * vm, uc * ys * vm, vc * yl * vm])
    b22, b31, b32 = _batched_sums([vc * ys * vm, yl * vm, ys * vm])
    a21, a31, a32, a33 = a12, a13, a23, cnt

    # closed-form 3x3 inverse of X^T X (replaces torch.inverse)
    c11 = a22 * a33 - a23 * a32
    c12 = a23 * a31 - a21 * a33
    c13 = a21 * a32 - a22 * a31
    c21 = a13 * a32 - a12 * a33
    c22 = a11 * a33 - a13 * a31
    c23 = a12 * a31 - a11 * a32
    c31 = a12 * a23 - a13 * a22
    c32 = a13 * a21 - a11 * a23
    c33 = a11 * a22 - a12 * a21
    det = a11 * c11 + a12 * c12 + a13 * c13
    # relative-threshold singularity guard (near-singular or <3 valid points -> loss_reg = 0)
    det_ok = jnp.abs(det) > 1e-6 * jnp.maximum(jnp.abs(a11 * a22 * a33), 1e-30)
    safe_det = jnp.where(det_ok, det, 1.0)
    inv_det = jnp.where(det_ok, 1.0 / safe_det, 0.0)
    i11, i12, i13 = c11 * inv_det, c21 * inv_det, c31 * inv_det
    i21, i22, i23 = c12 * inv_det, c22 * inv_det, c32 * inv_det
    i31, i32, i33 = c13 * inv_det, c23 * inv_det, c33 * inv_det

    # transform matrix T = (X^T X)^-1 X^T B  (3x2, scalar entries)
    t11 = i11 * b11 + i12 * b21 + i13 * b31
    t12 = i11 * b12 + i12 * b22 + i13 * b32
    t21 = i21 * b11 + i22 * b21 + i23 * b31
    t22 = i21 * b12 + i22 * b22 + i23 * b32
    t31 = i31 * b11 + i32 * b21 + i33 * b31
    t32 = i31 * b12 + i32 * b22 + i33 * b32

    reg_line = uc * t11 + vc * t21 + t31 + pl_m
    reg_samp = uc * t12 + vc * t22 + t32 + ps_m
    reg_norm = jnp.sqrt((reg_line - u) ** 2 + (reg_samp - v) ** 2)
    (s_reg,) = _batched_sums([reg_norm * vm])
    fit_ok = jnp.logical_and(det_ok, cnt >= 3.0)
    loss_reg = jnp.where(fit_ok, s_reg * inv_cnt, 0.0)    # mean over valid points only

    loss = (loss_obj + loss_height * _LOSS_HEIGHT_WEIGHT + loss_photo
            + loss_bias + loss_reg)

    # ---- single lane-dense output store: [loss, obj, height, photo, bias, reg, 0...] ----
    lane = jax.lax.broadcasted_iota(jnp.int32, (1, 128), 1)
    out_row = (jnp.where(lane == 0, loss, 0.0)
               + jnp.where(lane == 1, loss_obj, 0.0)
               + jnp.where(lane == 2, loss_height, 0.0)
               + jnp.where(lane == 3, loss_photo, 0.0)
               + jnp.where(lane == 4, loss_bias, 0.0)
               + jnp.where(lane == 5, loss_reg, 0.0))
    out_ref[...] = out_row


def mercator2lonlat(merc_xy):
    # standard web-mercator (x, y) -> stacked (lat, lon); reimplemented since the
    # original helper was not provided with the module.
    x, y = merc_xy[:, 0], merc_xy[:, 1]
    lon = x / _MERC_R * 180.0
    lat = y / _MERC_R * 180.0
    lat = 180.0 / jnp.pi * (2.0 * jnp.arctan(jnp.exp(lat * jnp.pi / 180.0)) - jnp.pi / 2.0)
    return jnp.stack([lat, lon], axis=1)


def criterion_train_element(epoch, max_epoch, xyh_pred, conf, linesamp_gt, xyh_gt,
                            rpc_coef, rpc_norm):
    # TODO(synk): the PyTorch module promotes everything to float64; the TPU kernel computes
    # in float32 (the affine fit uses centered normal equations to compensate).
    f32 = jnp.float32
    xyh_pred = xyh_pred.astype(f32)
    conf = conf.astype(f32)
    linesamp_gt = linesamp_gt.astype(f32)
    xyh_gt = xyh_gt.astype(f32)
    n = xyh_pred.shape[0]

    # Progress-derived scalars are host math, exactly like tanh_clamp's np.sqrt in torch.
    progress = float(epoch) / float(max_epoch)
    hi = 0.5 + progress * 0.4
    lo = 0.5 - progress * 0.4
    t = math.sqrt(max(1.0 - progress * progress, 0.0)) * _CLAMP_MAX + 1.0

    # TODO(synk): jnp.arctan has no guaranteed Mosaic lowering; the latitude branch of
    # mercator2lonlat stays in plain-JAX glue (lon is linear and computed inside the kernel).
    y_merc = xyh_pred[:, 0]
    lat_pred = 180.0 / jnp.pi * (
        2.0 * jnp.arctan(jnp.exp(y_merc / _MERC_R * jnp.pi)) - jnp.pi / 2.0)

    # ---- pack 10 per-point channels into ONE sublane/lane-dense operand ----
    # (the validity mask is rebuilt in-kernel from iota + n, no mask channel)
    chans = jnp.stack([
        xyh_pred[:, 0], xyh_pred[:, 1], xyh_pred[:, 2],
        xyh_gt[:, 0], xyh_gt[:, 1], xyh_gt[:, 2],
        linesamp_gt[:, 0], linesamp_gt[:, 1],
        lat_pred, conf,
    ], axis=0).astype(f32)                                # (10, n)
    # TODO(synk): for an HBM-bound large-N path the upstream producers should emit this
    # channel-major layout directly instead of paying a separate pack/pad pass here.
    n_pad = ((n + 1023) // 1024) * 1024                   # whole (8,128) vregs per channel
    if n_pad != n:
        # edge-replicate so padded RPC values stay finite; the in-kernel mask excludes them
        chans = jnp.pad(chans, ((0, 0), (0, n_pad - n)), mode="edge")
    r = n_pad // 128
    packed = chans.reshape(10, r, 128)

    # ---- flat SMEM parameter vector ----
    norm = rpc_norm.astype(f32)
    norm_k = jnp.stack([norm[0], 1.0 / norm[1], norm[2], 1.0 / norm[3],
                        norm[4], 1.0 / norm[5], norm[6], norm[7], norm[8], norm[9]])
    scalars = jnp.array([hi, lo, t, 1.0 / n, 1.0 / max(n - 1, 1), 1.0 / t,
                         float(n), 0.0], f32)
    params = jnp.concatenate(
        [scalars, norm_k, jnp.zeros((_PAR_COEF - _PAR_NORM - 10,), f32),
         rpc_coef.astype(f32).reshape(-1)])
    assert params.shape[0] == _PAR_LEN

    # TODO(synk): for very large N (~>1.3M points on v7x's 64 MiB VMEM) this should grow a
    # 1-D grid over the point axis with moment accumulators (and 'parallel' semantics to
    # use both v7x TensorCores); grid-less is fine at the point counts used here.
    out = pl.pallas_call(
        _criterion_kernel,
        out_shape=jax.ShapeDtypeStruct((1, 128), f32),
        in_specs=[pl.BlockSpec(memory_space=pltpu.MemorySpace.VMEM),
                  pl.BlockSpec(memory_space=pltpu.MemorySpace.SMEM)],
        out_specs=pl.BlockSpec(memory_space=pltpu.MemorySpace.VMEM),
        compiler_params=pltpu.CompilerParams(vmem_limit_bytes=32 * 1024 * 1024),
    )(packed, params)

    return out[0, 0], out[0, 1], out[0, 2], out[0, 3], out[0, 4], out[0, 5]


def _rpc_obj2photo_jnp(lat, lon, h, coef, norm):
    # plain-JAX RPC, used only to synthesize consistent ground-truth line/samp data
    P = (lat - norm[0]) / norm[1]
    L = (lon - norm[2]) / norm[3]
    H = (h - norm[4]) / norm[5]
    terms = jnp.stack([jnp.ones_like(P), L, P, H, L * P, L * H, P * H, L * L, P * P, H * H,
                       P * L * H, L ** 3, L * P * P, L * H * H, L * L * P,
                       P ** 3, P * H * H, L * L * H, P * P * H, H ** 3])
    vals = coef @ terms
    samp = vals[0] / vals[1] * norm[7] + norm[6]
    line = vals[2] / vals[3] * norm[9] + norm[8]
    return samp, line


if __name__ == "__main__":
    key = jax.random.PRNGKey(0)
    ks = jax.random.split(key, 8)
    N = 256
    f32 = jnp.float32

    # predicted mercator coordinates (col0 = northing, col1 = easting, col2 = height)
    base_northing, base_easting = 4.3e6, 1.302e7
    northing = base_northing + jax.random.uniform(ks[0], (N,), f32, -2000.0, 2000.0)
    easting = base_easting + jax.random.uniform(ks[1], (N,), f32, -2000.0, 2000.0)
    height = 100.0 + jax.random.uniform(ks[2], (N,), f32, -50.0, 50.0)
    xyh_pred = jnp.stack([northing, easting, height], axis=1)
    xyh_gt = xyh_pred + jnp.concatenate(
        [jax.random.uniform(ks[3], (N, 2), f32, -10.0, 10.0),
         jax.random.uniform(ks[4], (N, 1), f32, -5.0, 5.0)], axis=1)
    conf = jax.random.uniform(ks[5], (N,), f32, 0.0, 1.0)

    # deterministic synthetic RPC model parameters (RPC00B coefficient layout)
    snum = jnp.zeros(20, f32).at[0].set(0.01).at[1].set(1.0).at[2].set(0.05).at[3].set(0.02).at[7].set(0.003)
    sden = jnp.zeros(20, f32).at[0].set(1.0).at[1].set(0.001).at[2].set(0.001)
    lnum = jnp.zeros(20, f32).at[0].set(-0.02).at[1].set(0.03).at[2].set(1.0).at[3].set(0.04).at[8].set(0.002)
    lden = jnp.zeros(20, f32).at[0].set(1.0).at[1].set(0.0005).at[3].set(0.001)
    rpc_coef = jnp.stack([snum, sden, lnum, lden])            # (4, 20)
    # [LAT_OFF, LAT_SCALE, LONG_OFF, LONG_SCALE, HEIGHT_OFF, HEIGHT_SCALE,
    #  SAMP_OFF, SAMP_SCALE, LINE_OFF, LINE_SCALE]
    rpc_norm = jnp.array([36.0, 0.1, 116.96, 0.1, 100.0, 100.0,
                          1000.0, 1000.0, 1000.0, 1000.0], f32)

    # synthesize ground-truth line/samp from the gt points (+ a bit of pixel noise)
    latlon_gt = mercator2lonlat(xyh_gt[:, [1, 0]])
    samp_gt, line_gt = _rpc_obj2photo_jnp(latlon_gt[:, 0], latlon_gt[:, 1], xyh_gt[:, 2],
                                          rpc_coef, rpc_norm)
    linesamp_gt = jnp.stack([line_gt, samp_gt], axis=1) + \
        jax.random.uniform(ks[6], (N, 2), f32, -2.0, 2.0)

    epoch, max_epoch = 3, 10
    results = criterion_train_element(epoch, max_epoch, xyh_pred, conf,
                                      linesamp_gt, xyh_gt, rpc_coef, rpc_norm)
    results = jax.block_until_ready(results)
    assert all(bool(jnp.isfinite(r)) for r in results)
    print("KERNEL_OK")
</pallas_src>

<mosaic_0001>
module attributes {stable_mosaic.version = 11 : i64} {
  func.func @_criterion_kernel(%arg0: memref<10x8x128xf32, #tpu.memory_space<vmem>>, %arg1: memref<104xf32, #tpu.memory_space<smem>>, %arg2: memref<1x128xf32, #tpu.memory_space<vmem>>) attributes {dimension_semantics = [], scalar_prefetch = 0 : i64, scratch_operands = 0 : i64, tpu.core_type = #tpu.core_type<tc>} {
    %c0 = arith.constant 0 : index
    %0 = memref.load %arg1[%c0] : memref<104xf32, #tpu.memory_space<smem>>
    %c1 = arith.constant 1 : index
    %1 = memref.load %arg1[%c1] : memref<104xf32, #tpu.memory_space<smem>>
    %c2 = arith.constant 2 : index
    %2 = memref.load %arg1[%c2] : memref<104xf32, #tpu.memory_space<smem>>
    %c3 = arith.constant 3 : index
    %3 = memref.load %arg1[%c3] : memref<104xf32, #tpu.memory_space<smem>>
    %c4 = arith.constant 4 : index
    %4 = memref.load %arg1[%c4] : memref<104xf32, #tpu.memory_space<smem>>
    %c5 = arith.constant 5 : index
    %5 = memref.load %arg1[%c5] : memref<104xf32, #tpu.memory_space<smem>>
    %c6 = arith.constant 6 : index
    %6 = memref.load %arg1[%c6] : memref<104xf32, #tpu.memory_space<smem>>
    %7 = tpu.iota {dimensions = array<i32: 0>} : vector<8x128xi32>
    %8 = tpu.iota {dimensions = array<i32: 1>} : vector<8x128xi32>
    %c128_i32 = arith.constant 128 : i32
    %9 = vector.broadcast %c128_i32 : i32 to vector<8x128xi32>
    %10 = arith.muli %7, %9 : vector<8x128xi32>
    %11 = arith.addi %10, %8 : vector<8x128xi32>
    %12 = arith.sitofp %11 : vector<8x128xi32> to vector<8x128xf32>
    %13 = vector.broadcast %6 : f32 to vector<8x128xf32>
    %14 = arith.cmpf olt, %12, %13 : vector<8x128xf32>
    %15 = arith.extui %14 : vector<8x128xi1> to vector<8x128xi32>
    %16 = arith.sitofp %15 : vector<8x128xi32> to vector<8x128xf32>
    %c8 = arith.constant 8 : index
    %c0_0 = arith.constant 0 : index
    %c0_1 = arith.constant 0 : index
    %17 = vector.load %arg0[%c8, %c0_0, %c0_1] : memref<10x8x128xf32, #tpu.memory_space<vmem>>, vector<1x8x128xf32>
    %18 = vector.shape_cast %17 : vector<1x8x128xf32> to vector<8x128xf32>
    %c1_2 = arith.constant 1 : index
    %c0_3 = arith.constant 0 : index
    %c0_4 = arith.constant 0 : index
    %19 = vector.load %arg0[%c1_2, %c0_3, %c0_4] : memref<10x8x128xf32, #tpu.memory_space<vmem>>, vector<1x8x128xf32>
    %20 = vector.shape_cast %19 : vector<1x8x128xf32> to vector<8x128xf32>
    %cst = arith.constant 8.98315283E-6 : f32
    %21 = vector.broadcast %cst : f32 to vector<8x128xf32>
    %22 = arith.mulf %20, %21 : vector<8x128xf32>
    %c8_5 = arith.constant 8 : index
    %23 = memref.load %arg1[%c8_5] : memref<104xf32, #tpu.memory_space<smem>>
    %24 = vector.broadcast %23 : f32 to vector<8x128xf32>
    %25 = arith.subf %18, %24 : vector<8x128xf32>
    %c9 = arith.constant 9 : index
    %26 = memref.load %arg1[%c9] : memref<104xf32, #tpu.memory_space<smem>>
    %27 = vector.broadcast %26 : f32 to vector<8x128xf32>
    %28 = arith.mulf %25, %27 : vector<8x128xf32>
    %c10 = arith.constant 10 : index
    %29 = memref.load %arg1[%c10] : memref<104xf32, #tpu.memory_space<smem>>
    %30 = vector.broadcast %29 : f32 to vector<8x128xf32>
    %31 = arith.subf %22, %30 : vector<8x128xf32>
    %c11 = arith.constant 11 : index
    %32 = memref.load %arg1[%c11] : memref<104xf32, #tpu.memory_space<smem>>
    %33 = vector.broadcast %32 : f32 to vector<8x128xf32>
    %34 = arith.mulf %31, %33 : vector<8x128xf32>
    %c2_6 = arith.constant 2 : index
    %c0_7 = arith.constant 0 : index
    %c0_8 = arith.constant 0 : index
    %35 = vector.load %arg0[%c2_6, %c0_7, %c0_8] : memref<10x8x128xf32, #tpu.memory_space<vmem>>, vector<1x8x128xf32>
    %36 = vector.shape_cast %35 : vector<1x8x128xf32> to vector<8x128xf32>
    %c12 = arith.constant 12 : index
    %37 = memref.load %arg1[%c12] : memref<104xf32, #tpu.memory_space<smem>>
    %38 = vector.broadcast %37 : f32 to vector<8x128xf32>
    %39 = arith.subf %36, %38 : vector<8x128xf32>
    %c13 = arith.constant 13 : index
    %40 = memref.load %arg1[%c13] : memref<104xf32, #tpu.memory_space<smem>>
    %41 = vector.broadcast %40 : f32 to vector<8x128xf32>
    %42 = arith.mulf %39, %41 : vector<8x128xf32>
    %c24 = arith.constant 24 : index
    %43 = memref.load %arg1[%c24] : memref<104xf32, #tpu.memory_space<smem>>
    %44 = vector.broadcast %43 : f32 to vector<8x128xf32>
    %c44 = arith.constant 44 : index
    %45 = memref.load %arg1[%c44] : memref<104xf32, #tpu.memory_space<smem>>
    %46 = vector.broadcast %45 : f32 to vector<8x128xf32>
    %c64 = arith.constant 64 : index
    %47 = memref.load %arg1[%c64] : memref<104xf32, #tpu.memory_space<smem>>
    %48 = vector.broadcast %47 : f32 to vector<8x128xf32>
    %c84 = arith.constant 84 : index
    %49 = memref.load %arg1[%c84] : memref<104xf32, #tpu.memory_space<smem>>
    %50 = vector.broadcast %49 : f32 to vector<8x128xf32>
    %c25 = arith.constant 25 : index
    %51 = memref.load %arg1[%c25] : memref<104xf32, #tpu.memory_space<smem>>
    %52 = vector.broadcast %51 : f32 to vector<8x128xf32>
    %53 = arith.mulf %52, %34 : vector<8x128xf32>
    %54 = arith.addf %44, %53 : vector<8x128xf32>
    %c45 = arith.constant 45 : index
    %55 = memref.load %arg1[%c45] : memref<104xf32, #tpu.memory_space<smem>>
    %56 = vector.broadcast %55 : f32 to vector<8x128xf32>
    %57 = arith.mulf %56, %34 : vector<8x128xf32>
    %58 = arith.addf %46, %57 : vector<8x128xf32>
    %c65 = arith.constant 65 : index
    %59 = memref.load %arg1[%c65] : memref<104xf32, #tpu.memory_space<smem>>
    %60 = vector.broadcast %59 : f32 to vector<8x128xf32>
    %61 = arith.mulf %60, %34 : vector<8x128xf32>
    %62 = arith.addf %48, %61 : vector<8x128xf32>
    %c85 = arith.constant 85 : index
    %63 = memref.load %arg1[%c85] : memref<104xf32, #tpu.memory_space<smem>>
    %64 = vector.broadcast %63 : f32 to vector<8x128xf32>
    %65 = arith.mulf %64, %34 : vector<8x128xf32>
    %66 = arith.addf %50, %65 : vector<8x128xf32>
    %c26 = arith.constant 26 : index
    %67 = memref.load %arg1[%c26] : memref<104xf32, #tpu.memory_space<smem>>
    %68 = vector.broadcast %67 : f32 to vector<8x128xf32>
    %69 = arith.mulf %68, %28 : vector<8x128xf32>
    %70 = arith.addf %54, %69 : vector<8x128xf32>
    %c46 = arith.constant 46 : index
    %71 = memref.load %arg1[%c46] : memref<104xf32, #tpu.memory_space<smem>>
    %72 = vector.broadcast %71 : f32 to vector<8x128xf32>
    %73 = arith.mulf %72, %28 : vector<8x128xf32>
    %74 = arith.addf %58, %73 : vector<8x128xf32>
    %c66 = arith.constant 66 : index
    %75 = memref.load %arg1[%c66] : memref<104xf32, #tpu.memory_space<smem>>
    %76 = vector.broadcast %75 : f32 to vector<8x128xf32>
    %77 = arith.mulf %76, %28 : vector<8x128xf32>
    %78 = arith.addf %62, %77 : vector<8x128xf32>
    %c86 = arith.constant 86 : index
    %79 = memref.load %arg1[%c86] : memref<104xf32, #tpu.memory_space<smem>>
    %80 = vector.broadcast %79 : f32 to vector<8x128xf32>
    %81 = arith.mulf %80, %28 : vector<8x128xf32>
    %82 = arith.addf %66, %81 : vector<8x128xf32>
    %c27 = arith.constant 27 : index
    %83 = memref.load %arg1[%c27] : memref<104xf32, #tpu.memory_space<smem>>
    %84 = vector.broadcast %83 : f32 to vector<8x128xf32>
    %85 = arith.mulf %84, %42 : vector<8x128xf32>
    %86 = arith.addf %70, %85 : vector<8x128xf32>
    %c47 = arith.constant 47 : index
    %87 = memref.load %arg1[%c47] : memref<104xf32, #tpu.memory_space<smem>>
    %88 = vector.broadcast %87 : f32 to vector<8x128xf32>
    %89 = arith.mulf %88, %42 : vector<8x128xf32>
    %90 = arith.addf %74, %89 : vector<8x128xf32>
    %c67 = arith.constant 67 : index
    %91 = memref.load %arg1[%c67] : memref<104xf32, #tpu.memory_space<smem>>
    %92 = vector.broadcast %91 : f32 to vector<8x128xf32>
    %93 = arith.mulf %92, %42 : vector<8x128xf32>
    %94 = arith.addf %78, %93 : vector<8x128xf32>
    %c87 = arith.constant 87 : index
    %95 = memref.load %arg1[%c87] : memref<104xf32, #tpu.memory_space<smem>>
    %96 = vector.broadcast %95 : f32 to vector<8x128xf32>
    %97 = arith.mulf %96, %42 : vector<8x128xf32>
    %98 = arith.addf %82, %97 : vector<8x128xf32>
    %99 = arith.mulf %34, %28 : vector<8x128xf32>
    %c28 = arith.constant 28 : index
    %100 = memref.load %arg1[%c28] : memref<104xf32, #tpu.memory_space<smem>>
    %101 = vector.broadcast %100 : f32 to vector<8x128xf32>
    %102 = arith.mulf %101, %99 : vector<8x128xf32>
    %103 = arith.addf %86, %102 : vector<8x128xf32>
    %c48 = arith.constant 48 : index
    %104 = memref.load %arg1[%c48] : memref<104xf32, #tpu.memory_space<smem>>
    %105 = vector.broadcast %104 : f32 to vector<8x128xf32>
    %106 = arith.mulf %105, %99 : vector<8x128xf32>
    %107 = arith.addf %90, %106 : vector<8x128xf32>
    %c68 = arith.constant 68 : index
    %108 = memref.load %arg1[%c68] : memref<104xf32, #tpu.memory_space<smem>>
    %109 = vector.broadcast %108 : f32 to vector<8x128xf32>
    %110 = arith.mulf %109, %99 : vector<8x128xf32>
    %111 = arith.addf %94, %110 : vector<8x128xf32>
    %c88 = arith.constant 88 : index
    %112 = memref.load %arg1[%c88] : memref<104xf32, #tpu.memory_space<smem>>
    %113 = vector.broadcast %112 : f32 to vector<8x128xf32>
    %114 = arith.mulf %113, %99 : vector<8x128xf32>
    %115 = arith.addf %98, %114 : vector<8x128xf32>
    %116 = arith.mulf %34, %42 : vector<8x128xf32>
    %c29 = arith.constant 29 : index
    %117 = memref.load %arg1[%c29] : memref<104xf32, #tpu.memory_space<smem>>
    %118 = vector.broadcast %117 : f32 to vector<8x128xf32>
    %119 = arith.mulf %118, %116 : vector<8x128xf32>
    %120 = arith.addf %103, %119 : vector<8x128xf32>
    %c49 = arith.constant 49 : index
    %121 = memref.load %arg1[%c49] : memref<104xf32, #tpu.memory_space<smem>>
    %122 = vector.broadcast %121 : f32 to vector<8x128xf32>
    %123 = arith.mulf %122, %116 : vector<8x128xf32>
    %124 = arith.addf %107, %123 : vector<8x128xf32>
    %c69 = arith.constant 69 : index
    %125 = memref.load %arg1[%c69] : memref<104xf32, #tpu.memory_space<smem>>
    %126 = vector.broadcast %125 : f32 to vector<8x128xf32>
    %127 = arith.mulf %126, %116 : vector<8x128xf32>
    %128 = arith.addf %111, %127 : vector<8x128xf32>
    %c89 = arith.constant 89 : index
    %129 = memref.load %arg1[%c89] : memref<104xf32, #tpu.memory_space<smem>>
    %130 = vector.broadcast %129 : f32 to vector<8x128xf32>
    %131 = arith.mulf %130, %116 : vector<8x128xf32>
    %132 = arith.addf %115, %131 : vector<8x128xf32>
    %133 = arith.mulf %28, %42 : vector<8x128xf32>
    %c30 = arith.constant 30 : index
    %134 = memref.load %arg1[%c30] : memref<104xf32, #tpu.memory_space<smem>>
    %135 = vector.broadcast %134 : f32 to vector<8x128xf32>
    %136 = arith.mulf %135, %133 : vector<8x128xf32>
    %137 = arith.addf %120, %136 : vector<8x128xf32>
    %c50 = arith.constant 50 : index
    %138 = memref.load %arg1[%c50] : memref<104xf32, #tpu.memory_space<smem>>
    %139 = vector.broadcast %138 : f32 to vector<8x128xf32>
    %140 = arith.mulf %139, %133 : vector<8x128xf32>
    %141 = arith.addf %124, %140 : vector<8x128xf32>
    %c70 = arith.constant 70 : index
    %142 = memref.load %arg1[%c70] : memref<104xf32, #tpu.memory_space<smem>>
    %143 = vector.broadcast %142 : f32 to vector<8x128xf32>
    %144 = arith.mulf %143, %133 : vector<8x128xf32>
    %145 = arith.addf %128, %144 : vector<8x128xf32>
    %c90 = arith.constant 90 : index
    %146 = memref.load %arg1[%c90] : memref<104xf32, #tpu.memory_space<smem>>
    %147 = vector.broadcast %146 : f32 to vector<8x128xf32>
    %148 = arith.mulf %147, %133 : vector<8x128xf32>
    %149 = arith.addf %132, %148 : vector<8x128xf32>
    %150 = arith.mulf %99, %42 : vector<8x128xf32>
    %c34 = arith.constant 34 : index
    %151 = memref.load %arg1[%c34] : memref<104xf32, #tpu.memory_space<smem>>
    %152 = vector.broadcast %151 : f32 to vector<8x128xf32>
    %153 = arith.mulf %152, %150 : vector<8x128xf32>
    %154 = arith.addf %137, %153 : vector<8x128xf32>
    %c54 = arith.constant 54 : index
    %155 = memref.load %arg1[%c54] : memref<104xf32, #tpu.memory_space<smem>>
    %156 = vector.broadcast %155 : f32 to vector<8x128xf32>
    %157 = arith.mulf %156, %150 : vector<8x128xf32>
    %158 = arith.addf %141, %157 : vector<8x128xf32>
    %c74 = arith.constant 74 : index
    %159 = memref.load %arg1[%c74] : memref<104xf32, #tpu.memory_space<smem>>
    %160 = vector.broadcast %159 : f32 to vector<8x128xf32>
    %161 = arith.mulf %160, %150 : vector<8x128xf32>
    %162 = arith.addf %145, %161 : vector<8x128xf32>
    %c94 = arith.constant 94 : index
    %163 = memref.load %arg1[%c94] : memref<104xf32, #tpu.memory_space<smem>>
    %164 = vector.broadcast %163 : f32 to vector<8x128xf32>
    %165 = arith.mulf %164, %150 : vector<8x128xf32>
    %166 = arith.addf %149, %165 : vector<8x128xf32>
    %167 = arith.mulf %34, %34 : vector<8x128xf32>
    %168 = arith.mulf %28, %28 : vector<8x128xf32>
    %169 = arith.mulf %42, %42 : vector<8x128xf32>
    %c31 = arith.constant 31 : index
    %170 = memref.load %arg1[%c31] : memref<104xf32, #tpu.memory_space<smem>>
    %171 = vector.broadcast %170 : f32 to vector<8x128xf32>
    %172 = arith.mulf %171, %167 : vector<8x128xf32>
    %173 = arith.addf %154, %172 : vector<8x128xf32>
    %c51 = arith.constant 51 : index
    %174 = memref.load %arg1[%c51] : memref<104xf32, #tpu.memory_space<smem>>
    %175 = vector.broadcast %174 : f32 to vector<8x128xf32>
    %176 = arith.mulf %175, %167 : vector<8x128xf32>
    %177 = arith.addf %158, %176 : vector<8x128xf32>
    %c71 = arith.constant 71 : index
    %178 = memref.load %arg1[%c71] : memref<104xf32, #tpu.memory_space<smem>>
    %179 = vector.broadcast %178 : f32 to vector<8x128xf32>
    %180 = arith.mulf %179, %167 : vector<8x128xf32>
    %181 = arith.addf %162, %180 : vector<8x128xf32>
    %c91 = arith.constant 91 : index
    %182 = memref.load %arg1[%c91] : memref<104xf32, #tpu.memory_space<smem>>
    %183 = vector.broadcast %182 : f32 to vector<8x128xf32>
    %184 = arith.mulf %183, %167 : vector<8x128xf32>
    %185 = arith.addf %166, %184 : vector<8x128xf32>
    %c32 = arith.constant 32 : index
    %186 = memref.load %arg1[%c32] : memref<104xf32, #tpu.memory_space<smem>>
    %187 = vector.broadcast %186 : f32 to vector<8x128xf32>
    %188 = arith.mulf %187, %168 : vector<8x128xf32>
    %189 = arith.addf %173, %188 : vector<8x128xf32>
    %c52 = arith.constant 52 : index
    %190 = memref.load %arg1[%c52] : memref<104xf32, #tpu.memory_space<smem>>
    %191 = vector.broadcast %190 : f32 to vector<8x128xf32>
    %192 = arith.mulf %191, %168 : vector<8x128xf32>
    %193 = arith.addf %177, %192 : vector<8x128xf32>
    %c72 = arith.constant 72 : index
    %194 = memref.load %arg1[%c72] : memref<104xf32, #tpu.memory_space<smem>>
    %195 = vector.broadcast %194 : f32 to vector<8x128xf32>
    %196 = arith.mulf %195, %168 : vector<8x128xf32>
    %197 = arith.addf %181, %196 : vector<8x128xf32>
    %c92 = arith.constant 92 : index
    %198 = memref.load %arg1[%c92] : memref<104xf32, #tpu.memory_space<smem>>
    %199 = vector.broadcast %198 : f32 to vector<8x128xf32>
    %200 = arith.mulf %199, %168 : vector<8x128xf32>
    %201 = arith.addf %185, %200 : vector<8x128xf32>
    %c33 = arith.constant 33 : index
    %202 = memref.load %arg1[%c33] : memref<104xf32, #tpu.memory_space<smem>>
    %203 = vector.broadcast %202 : f32 to vector<8x128xf32>
    %204 = arith.mulf %203, %169 : vector<8x128xf32>
    %205 = arith.addf %189, %204 : vector<8x128xf32>
    %c53 = arith.constant 53 : index
    %206 = memref.load %arg1[%c53] : memref<104xf32, #tpu.memory_space<smem>>
    %207 = vector.broadcast %206 : f32 to vector<8x128xf32>
    %208 = arith.mulf %207, %169 : vector<8x128xf32>
    %209 = arith.addf %193, %208 : vector<8x128xf32>
    %c73 = arith.constant 73 : index
    %210 = memref.load %arg1[%c73] : memref<104xf32, #tpu.memory_space<smem>>
    %211 = vector.broadcast %210 : f32 to vector<8x128xf32>
    %212 = arith.mulf %211, %169 : vector<8x128xf32>
    %213 = arith.addf %197, %212 : vector<8x128xf32>
    %c93 = arith.constant 93 : index
    %214 = memref.load %arg1[%c93] : memref<104xf32, #tpu.memory_space<smem>>
    %215 = vector.broadcast %214 : f32 to vector<8x128xf32>
    %216 = arith.mulf %215, %169 : vector<8x128xf32>
    %217 = arith.addf %201, %216 : vector<8x128xf32>
    %218 = arith.mulf %167, %34 : vector<8x128xf32>
    %c35 = arith.constant 35 : index
    %219 = memref.load %arg1[%c35] : memref<104xf32, #tpu.memory_space<smem>>
    %220 = vector.broadcast %219 : f32 to vector<8x128xf32>
    %221 = arith.mulf %220, %218 : vector<8x128xf32>
    %222 = arith.addf %205, %221 : vector<8x128xf32>
    %c55 = arith.constant 55 : index
    %223 = memref.load %arg1[%c55] : memref<104xf32, #tpu.memory_space<smem>>
    %224 = vector.broadcast %223 : f32 to vector<8x128xf32>
    %225 = arith.mulf %224, %218 : vector<8x128xf32>
    %226 = arith.addf %209, %225 : vector<8x128xf32>
    %c75 = arith.constant 75 : index
    %227 = memref.load %arg1[%c75] : memref<104xf32, #tpu.memory_space<smem>>
    %228 = vector.broadcast %227 : f32 to vector<8x128xf32>
    %229 = arith.mulf %228, %218 : vector<8x128xf32>
    %230 = arith.addf %213, %229 : vector<8x128xf32>
    %c95 = arith.constant 95 : index
    %231 = memref.load %arg1[%c95] : memref<104xf32, #tpu.memory_space<smem>>
    %232 = vector.broadcast %231 : f32 to vector<8x128xf32>
    %233 = arith.mulf %232, %218 : vector<8x128xf32>
    %234 = arith.addf %217, %233 : vector<8x128xf32>
    %235 = arith.mulf %34, %168 : vector<8x128xf32>
    %c36 = arith.constant 36 : index
    %236 = memref.load %arg1[%c36] : memref<104xf32, #tpu.memory_space<smem>>
    %237 = vector.broadcast %236 : f32 to vector<8x128xf32>
    %238 = arith.mulf %237, %235 : vector<8x128xf32>
    %239 = arith.addf %222, %238 : vector<8x128xf32>
    %c56 = arith.constant 56 : index
    %240 = memref.load %arg1[%c56] : memref<104xf32, #tpu.memory_space<smem>>
    %241 = vector.broadcast %240 : f32 to vector<8x128xf32>
    %242 = arith.mulf %241, %235 : vector<8x128xf32>
    %243 = arith.addf %226, %242 : vector<8x128xf32>
    %c76 = arith.constant 76 : index
    %244 = memref.load %arg1[%c76] : memref<104xf32, #tpu.memory_space<smem>>
    %245 = vector.broadcast %244 : f32 to vector<8x128xf32>
    %246 = arith.mulf %245, %235 : vector<8x128xf32>
    %247 = arith.addf %230, %246 : vector<8x128xf32>
    %c96 = arith.constant 96 : index
    %248 = memref.load %arg1[%c96] : memref<104xf32, #tpu.memory_space<smem>>
    %249 = vector.broadcast %248 : f32 to vector<8x128xf32>
    %250 = arith.mulf %249, %235 : vector<8x128xf32>
    %251 = arith.addf %234, %250 : vector<8x128xf32>
    %252 = arith.mulf %34, %169 : vector<8x128xf32>
    %c37 = arith.constant 37 : index
    %253 = memref.load %arg1[%c37] : memref<104xf32, #tpu.memory_space<smem>>
    %254 = vector.broadcast %253 : f32 to vector<8x128xf32>
    %255 = arith.mulf %254, %252 : vector<8x128xf32>
    %256 = arith.addf %239, %255 : vector<8x128xf32>
    %c57 = arith.constant 57 : index
    %257 = memref.load %arg1[%c57] : memref<104xf32, #tpu.memory_space<smem>>
    %258 = vector.broadcast %257 : f32 to vector<8x128xf32>
    %259 = arith.mulf %258, %252 : vector<8x128xf32>
    %260 = arith.addf %243, %259 : vector<8x128xf32>
    %c77 = arith.constant 77 : index
    %261 = memref.load %arg1[%c77] : memref<104xf32, #tpu.memory_space<smem>>
    %262 = vector.broadcast %261 : f32 to vector<8x128xf32>
    %263 = arith.mulf %262, %252 : vector<8x128xf32>
    %264 = arith.addf %247, %263 : vector<8x128xf32>
    %c97 = arith.constant 97 : index
    %265 = memref.load %arg1[%c97] : memref<104xf32, #tpu.memory_space<smem>>
    %266 = vector.broadcast %265 : f32 to vector<8x128xf32>
    %267 = arith.mulf %266, %252 : vector<8x128xf32>
    %268 = arith.addf %251, %267 : vector<8x128xf32>
    %269 = arith.mulf %167, %28 : vector<8x128xf32>
    %c38 = arith.constant 38 : index
    %270 = memref.load %arg1[%c38] : memref<104xf32, #tpu.memory_space<smem>>
    %271 = vector.broadcast %270 : f32 to vector<8x128xf32>
    %272 = arith.mulf %271, %269 : vector<8x128xf32>
    %273 = arith.addf %256, %272 : vector<8x128xf32>
    %c58 = arith.constant 58 : index
    %274 = memref.load %arg1[%c58] : memref<104xf32, #tpu.memory_space<smem>>
    %275 = vector.broadcast %274 : f32 to vector<8x128xf32>
    %276 = arith.mulf %275, %269 : vector<8x128xf32>
    %277 = arith.addf %260, %276 : vector<8x128xf32>
    %c78 = arith.constant 78 : index
    %278 = memref.load %arg1[%c78] : memref<104xf32, #tpu.memory_space<smem>>
    %279 = vector.broadcast %278 : f32 to vector<8x128xf32>
    %280 = arith.mulf %279, %269 : vector<8x128xf32>
    %281 = arith.addf %264, %280 : vector<8x128xf32>
    %c98 = arith.constant 98 : index
    %282 = memref.load %arg1[%c98] : memref<104xf32, #tpu.memory_space<smem>>
    %283 = vector.broadcast %282 : f32 to vector<8x128xf32>
    %284 = arith.mulf %283, %269 : vector<8x128xf32>
    %285 = arith.addf %268, %284 : vector<8x128xf32>
    %286 = arith.mulf %168, %28 : vector<8x128xf32>
    %c39 = arith.constant 39 : index
    %287 = memref.load %arg1[%c39] : memref<104xf32, #tpu.memory_space<smem>>
    %288 = vector.broadcast %287 : f32 to vector<8x128xf32>
    %289 = arith.mulf %288, %286 : vector<8x128xf32>
    %290 = arith.addf %273, %289 : vector<8x128xf32>
    %c59 = arith.constant 59 : index
    %291 = memref.load %arg1[%c59] : memref<104xf32, #tpu.memory_space<smem>>
    %292 = vector.broadcast %291 : f32 to vector<8x128xf32>
    %293 = arith.mulf %292, %286 : vector<8x128xf32>
    %294 = arith.addf %277, %293 : vector<8x128xf32>
    %c79 = arith.constant 79 : index
    %295 = memref.load %arg1[%c79] : memref<104xf32, #tpu.memory_space<smem>>
    %296 = vector.broadcast %295 : f32 to vector<8x128xf32>
    %297 = arith.mulf %296, %286 : vector<8x128xf32>
    %298 = arith.addf %281, %297 : vector<8x128xf32>
    %c99 = arith.constant 99 : index
    %299 = memref.load %arg1[%c99] : memref<104xf32, #tpu.memory_space<smem>>
    %300 = vector.broadcast %299 : f32 to vector<8x128xf32>
    %301 = arith.mulf %300, %286 : vector<8x128xf32>
    %302 = arith.addf %285, %301 : vector<8x128xf32>
    %303 = arith.mulf %28, %169 : vector<8x128xf32>
    %c40 = arith.constant 40 : index
    %304 = memref.load %arg1[%c40] : memref<104xf32, #tpu.memory_space<smem>>
    %305 = vector.broadcast %304 : f32 to vector<8x128xf32>
    %306 = arith.mulf %305, %303 : vector<8x128xf32>
    %307 = arith.addf %290, %306 : vector<8x128xf32>
    %c60 = arith.constant 60 : index
    %308 = memref.load %arg1[%c60] : memref<104xf32, #tpu.memory_space<smem>>
    %309 = vector.broadcast %308 : f32 to vector<8x128xf32>
    %310 = arith.mulf %309, %303 : vector<8x128xf32>
    %311 = arith.addf %294, %310 : vector<8x128xf32>
    %c80 = arith.constant 80 : index
    %312 = memref.load %arg1[%c80] : memref<104xf32, #tpu.memory_space<smem>>
    %313 = vector.broadcast %312 : f32 to vector<8x128xf32>
    %314 = arith.mulf %313, %303 : vector<8x128xf32>
    %315 = arith.addf %298, %314 : vector<8x128xf32>
    %c100 = arith.constant 100 : index
    %316 = memref.load %arg1[%c100] : memref<104xf32, #tpu.memory_space<smem>>
    %317 = vector.broadcast %316 : f32 to vector<8x128xf32>
    %318 = arith.mulf %317, %303 : vector<8x128xf32>
    %319 = arith.addf %302, %318 : vector<8x128xf32>
    %320 = arith.mulf %167, %42 : vector<8x128xf32>
    %c41 = arith.constant 41 : index
    %321 = memref.load %arg1[%c41] : memref<104xf32, #tpu.memory_space<smem>>
    %322 = vector.broadcast %321 : f32 to vector<8x128xf32>
    %323 = arith.mulf %322, %320 : vector<8x128xf32>
    %324 = arith.addf %307, %323 : vector<8x128xf32>
    %c61 = arith.constant 61 : index
    %325 = memref.load %arg1[%c61] : memref<104xf32, #tpu.memory_space<smem>>
    %326 = vector.broadcast %325 : f32 to vector<8x128xf32>
    %327 = arith.mulf %326, %320 : vector<8x128xf32>
    %328 = arith.addf %311, %327 : vector<8x128xf32>
    %c81 = arith.constant 81 : index
    %329 = memref.load %arg1[%c81] : memref<104xf32, #tpu.memory_space<smem>>
    %330 = vector.broadcast %329 : f32 to vector<8x128xf32>
    %331 = arith.mulf %330, %320 : vector<8x128xf32>
    %332 = arith.addf %315, %331 : vector<8x128xf32>
    %c101 = arith.constant 101 : index
    %333 = memref.load %arg1[%c101] : memref<104xf32, #tpu.memory_space<smem>>
    %334 = vector.broadcast %333 : f32 to vector<8x128xf32>
    %335 = arith.mulf %334, %320 : vector<8x128xf32>
    %336 = arith.addf %319, %335 : vector<8x128xf32>
    %337 = arith.mulf %168, %42 : vector<8x128xf32>
    %c42 = arith.constant 42 : index
    %338 = memref.load %arg1[%c42] : memref<104xf32, #tpu.memory_space<smem>>
    %339 = vector.broadcast %338 : f32 to vector<8x128xf32>
    %340 = arith.mulf %339, %337 : vector<8x128xf32>
    %341 = arith.addf %324, %340 : vector<8x128xf32>
    %c62 = arith.constant 62 : index
    %342 = memref.load %arg1[%c62] : memref<104xf32, #tpu.memory_space<smem>>
    %343 = vector.broadcast %342 : f32 to vector<8x128xf32>
    %344 = arith.mulf %343, %337 : vector<8x128xf32>
    %345 = arith.addf %328, %344 : vector<8x128xf32>
    %c82 = arith.constant 82 : index
    %346 = memref.load %arg1[%c82] : memref<104xf32, #tpu.memory_space<smem>>
    %347 = vector.broadcast %346 : f32 to vector<8x128xf32>
    %348 = arith.mulf %347, %337 : vector<8x128xf32>
    %349 = arith.addf %332, %348 : vector<8x128xf32>
    %c102 = arith.constant 102 : index
    %350 = memref.load %arg1[%c102] : memref<104xf32, #tpu.memory_space<smem>>
    %351 = vector.broadcast %350 : f32 to vector<8x128xf32>
    %352 = arith.mulf %351, %337 : vector<8x128xf32>
    %353 = arith.addf %336, %352 : vector<8x128xf32>
    %354 = arith.mulf %169, %42 : vector<8x128xf32>
    %c43 = arith.constant 43 : index
    %355 = memref.load %arg1[%c43] : memref<104xf32, #tpu.memory_space<smem>>
    %356 = vector.broadcast %355 : f32 to vector<8x128xf32>
    %357 = arith.mulf %356, %354 : vector<8x128xf32>
    %358 = arith.addf %341, %357 : vector<8x128xf32>
    %c63 = arith.constant 63 : index
    %359 = memref.load %arg1[%c63] : memref<104xf32, #tpu.memory_space<smem>>
    %360 = vector.broadcast %359 : f32 to vector<8x128xf32>
    %361 = arith.mulf %360, %354 : vector<8x128xf32>
    %362 = arith.addf %345, %361 : vector<8x128xf32>
    %c83 = arith.constant 83 : index
    %363 = memref.load %arg1[%c83] : memref<104xf32, #tpu.memory_space<smem>>
    %364 = vector.broadcast %363 : f32 to vector<8x128xf32>
    %365 = arith.mulf %364, %354 : vector<8x128xf32>
    %366 = arith.addf %349, %365 : vector<8x128xf32>
    %c103 = arith.constant 103 : index
    %367 = memref.load %arg1[%c103] : memref<104xf32, #tpu.memory_space<smem>>
    %368 = vector.broadcast %367 : f32 to vector<8x128xf32>
    %369 = arith.mulf %368, %354 : vector<8x128xf32>
    %370 = arith.addf %353, %369 : vector<8x128xf32>
    %371 = tpu.reciprocal %362 {approx = true} : vector<8x128xf32> -> vector<8x128xf32>
    %372 = arith.mulf %362, %371 : vector<8x128xf32>
    %cst_9 = arith.constant 2.000000e+00 : f32
    %373 = vector.broadcast %cst_9 : f32 to vector<8x128xf32>
    %374 = arith.subf %373, %372 : vector<8x128xf32>
    %375 = arith.mulf %371, %374 : vector<8x128xf32>
    %376 = tpu.reciprocal %370 {approx = true} : vector<8x128xf32> -> vector<8x128xf32>
    %377 = arith.mulf %370, %376 : vector<8x128xf32>
    %cst_10 = arith.constant 2.000000e+00 : f32
    %378 = vector.broadcast %cst_10 : f32 to vector<8x128xf32>
    %379 = arith.subf %378, %377 : vector<8x128xf32>
    %380 = arith.mulf %376, %379 : vector<8x128xf32>
    %381 = arith.mulf %358, %375 : vector<8x128xf32>
    %c15 = arith.constant 15 : index
    %382 = memref.load %arg1[%c15] : memref<104xf32, #tpu.memory_space<smem>>
    %383 = vector.broadcast %382 : f32 to vector<8x128xf32>
    %384 = arith.mulf %381, %383 : vector<8x128xf32>
    %c14 = arith.constant 14 : index
    %385 = memref.load %arg1[%c14] : memref<104xf32, #tpu.memory_space<smem>>
    %386 = vector.broadcast %385 : f32 to vector<8x128xf32>
    %387 = arith.addf %384, %386 : vector<8x128xf32>
    %388 = arith.mulf %366, %380 : vector<8x128xf32>
    %c17 = arith.constant 17 : index
    %389 = memref.load %arg1[%c17] : memref<104xf32, #tpu.memory_space<smem>>
    %390 = vector.broadcast %389 : f32 to vector<8x128xf32>
    %391 = arith.mulf %388, %390 : vector<8x128xf32>
    %c16 = arith.constant 16 : index
    %392 = memref.load %arg1[%c16] : memref<104xf32, #tpu.memory_space<smem>>
    %393 = vector.broadcast %392 : f32 to vector<8x128xf32>
    %394 = arith.addf %391, %393 : vector<8x128xf32>
    %c9_11 = arith.constant 9 : index
    %c0_12 = arith.constant 0 : index
    %c0_13 = arith.constant 0 : index
    %395 = vector.load %arg0[%c9_11, %c0_12, %c0_13] : memref<10x8x128xf32, #tpu.memory_space<vmem>>, vector<1x8x128xf32>
    %396 = vector.shape_cast %395 : vector<1x8x128xf32> to vector<8x128xf32>
    %cst_14 = arith.constant 5.000000e-01 : f32
    %397 = vector.broadcast %cst_14 : f32 to vector<8x128xf32>
    %398 = arith.cmpf ogt, %396, %397 : vector<8x128xf32>
    %399 = vector.broadcast %0 : f32 to vector<8x128xf32>
    %400 = arith.select %398, %399, %396 : vector<8x128xi1>, vector<8x128xf32>
    %cst_15 = arith.constant 5.000000e-01 : f32
    %401 = vector.broadcast %cst_15 : f32 to vector<8x128xf32>
    %402 = arith.cmpf olt, %400, %401 : vector<8x128xf32>
    %403 = vector.broadcast %1 : f32 to vector<8x128xf32>
    %404 = arith.select %402, %403, %400 : vector<8x128xi1>, vector<8x128xf32>
    %c6_16 = arith.constant 6 : index
    %c0_17 = arith.constant 0 : index
    %c0_18 = arith.constant 0 : index
    %405 = vector.load %arg0[%c6_16, %c0_17, %c0_18] : memref<10x8x128xf32, #tpu.memory_space<vmem>>, vector<1x8x128xf32>
    %406 = vector.shape_cast %405 : vector<1x8x128xf32> to vector<8x128xf32>
    %c7 = arith.constant 7 : index
    %c0_19 = arith.constant 0 : index
    %c0_20 = arith.constant 0 : index
    %407 = vector.load %arg0[%c7, %c0_19, %c0_20] : memref<10x8x128xf32, #tpu.memory_space<vmem>>, vector<1x8x128xf32>
    %408 = vector.shape_cast %407 : vector<1x8x128xf32> to vector<8x128xf32>
    %409 = arith.mulf %404, %16 : vector<8x128xf32>
    %410 = arith.mulf %406, %16 : vector<8x128xf32>
    %411 = arith.mulf %408, %16 : vector<8x128xf32>
    %412 = arith.mulf %394, %16 : vector<8x128xf32>
    %413 = arith.mulf %387, %16 : vector<8x128xf32>
    %cst_21 = arith.constant dense<0.000000e+00> : vector<128xf32>
    %414 = vector.multi_reduction <add>, %409, %cst_21 [0] : vector<8x128xf32> to vector<128xf32>
    %415 = vector.shape_cast %414 : vector<128xf32> to vector<1x128xf32>
    %cst_22 = arith.constant dense<0.000000e+00> : vector<128xf32>
    %416 = vector.multi_reduction <add>, %410, %cst_22 [0] : vector<8x128xf32> to vector<128xf32>
    %417 = vector.shape_cast %416 : vector<128xf32> to vector<1x128xf32>
    %cst_23 = arith.constant dense<0.000000e+00> : vector<128xf32>
    %418 = vector.multi_reduction <add>, %411, %cst_23 [0] : vector<8x128xf32> to vector<128xf32>
    %419 = vector.shape_cast %418 : vector<128xf32> to vector<1x128xf32>
    %cst_24 = arith.constant dense<0.000000e+00> : vector<128xf32>
    %420 = vector.multi_reduction <add>, %412, %cst_24 [0] : vector<8x128xf32> to vector<128xf32>
    %421 = vector.shape_cast %420 : vector<128xf32> to vector<1x128xf32>
    %cst_25 = arith.constant dense<0.000000e+00> : vector<128xf32>
    %422 = vector.multi_reduction <add>, %413, %cst_25 [0] : vector<8x128xf32> to vector<128xf32>
    %423 = vector.shape_cast %422 : vector<128xf32> to vector<1x128xf32>
    %424 = tpu.concatenate %415, %417, %419, %421, %423 in 0 : vector<1x128xf32>, vector<1x128xf32>, vector<1x128xf32>, vector<1x128xf32>, vector<1x128xf32> -> vector<5x128xf32>
    %cst_26 = arith.constant dense<0.000000e+00> : vector<5xf32>
    %425 = vector.multi_reduction <add>, %424, %cst_26 [1] : vector<5x128xf32> to vector<5xf32>
    %426 = vector.shape_cast %425 : vector<5xf32> to vector<5x1xf32>
    %427 = vector.extract_strided_slice %426 {offsets = [0, 0], sizes = [1, 1], strides = [1, 1]} : vector<5x1xf32> to vector<1x1xf32>
    %428 = vector.extract_strided_slice %426 {offsets = [1, 0], sizes = [1, 1], strides = [1, 1]} : vector<5x1xf32> to vector<1x1xf32>
    %429 = vector.extract_strided_slice %426 {offsets = [2, 0], sizes = [1, 1], strides = [1, 1]} : vector<5x1xf32> to vector<1x1xf32>
    %430 = vector.extract_strided_slice %426 {offsets = [3, 0], sizes = [1, 1], strides = [1, 1]} : vector<5x1xf32> to vector<1x1xf32>
    %431 = vector.extract_strided_slice %426 {offsets = [4, 0], sizes = [1, 1], strides = [1, 1]} : vector<5x1xf32> to vector<1x1xf32>
    %432 = vector.broadcast %3 : f32 to vector<1x1xf32>
    %433 = arith.mulf %427, %432 : vector<1x1xf32>
    %434 = vector.broadcast %3 : f32 to vector<1x1xf32>
    %435 = arith.mulf %428, %434 : vector<1x1xf32>
    %436 = vector.broadcast %3 : f32 to vector<1x1xf32>
    %437 = arith.mulf %429, %436 : vector<1x1xf32>
    %438 = vector.broadcast %3 : f32 to vector<1x1xf32>
    %439 = arith.mulf %430, %438 : vector<1x1xf32>
    %440 = vector.broadcast %3 : f32 to vector<1x1xf32>
    %441 = arith.mulf %431, %440 : vector<1x1xf32>
    %442 = vector.broadcast %433 : vector<1x1xf32> to vector<8x128xf32>
    %443 = arith.subf %404, %442 : vector<8x128xf32>
    %cst_27 = arith.constant 1.000000e+00 : f32
    %444 = vector.broadcast %cst_27 : f32 to vector<8x128xf32>
    %445 = arith.addf %443, %444 : vector<8x128xf32>
    %cst_28 = arith.constant 0.000000e+00 : f32
    %446 = vector.broadcast %cst_28 : f32 to vector<8x128xf32>
    %447 = arith.maximumf %445, %446 : vector<8x128xf32>
    %448 = arith.mulf %447, %16 : vector<8x128xf32>
    %449 = arith.subf %394, %406 : vector<8x128xf32>
    %450 = arith.subf %387, %408 : vector<8x128xf32>
    %451 = vector.broadcast %5 : f32 to vector<8x128xf32>
    %452 = arith.mulf %449, %451 : vector<8x128xf32>
    %453 = math.tanh %452 : vector<8x128xf32>
    %454 = vector.broadcast %2 : f32 to vector<8x128xf32>
    %455 = arith.mulf %454, %453 : vector<8x128xf32>
    %456 = vector.broadcast %5 : f32 to vector<8x128xf32>
    %457 = arith.mulf %450, %456 : vector<8x128xf32>
    %458 = math.tanh %457 : vector<8x128xf32>
    %459 = vector.broadcast %2 : f32 to vector<8x128xf32>
    %460 = arith.mulf %459, %458 : vector<8x128xf32>
    %461 = arith.mulf %449, %449 : vector<8x128xf32>
    %462 = arith.mulf %450, %450 : vector<8x128xf32>
    %463 = arith.addf %461, %462 : vector<8x128xf32>
    %464 = math.sqrt %463 : vector<8x128xf32>
    %c0_29 = arith.constant 0 : index
    %c0_30 = arith.constant 0 : index
    %c0_31 = arith.constant 0 : index
    %465 = vector.load %arg0[%c0_29, %c0_30, %c0_31] : memref<10x8x128xf32, #tpu.memory_space<vmem>>, vector<1x8x128xf32>
    %466 = vector.shape_cast %465 : vector<1x8x128xf32> to vector<8x128xf32>
    %c3_32 = arith.constant 3 : index
    %c0_33 = arith.constant 0 : index
    %c0_34 = arith.constant 0 : index
    %467 = vector.load %arg0[%c3_32, %c0_33, %c0_34] : memref<10x8x128xf32, #tpu.memory_space<vmem>>, vector<1x8x128xf32>
    %468 = vector.shape_cast %467 : vector<1x8x128xf32> to vector<8x128xf32>
    %469 = arith.subf %466, %468 : vector<8x128xf32>
    %470 = arith.mulf %469, %469 : vector<8x128xf32>
    %c1_35 = arith.constant 1 : index
    %c0_36 = arith.constant 0 : index
    %c0_37 = arith.constant 0 : index
    %471 = vector.load %arg0[%c1_35, %c0_36, %c0_37] : memref<10x8x128xf32, #tpu.memory_space<vmem>>, vector<1x8x128xf32>
    %472 = vector.shape_cast %471 : vector<1x8x128xf32> to vector<8x128xf32>
    %c4_38 = arith.constant 4 : index
    %c0_39 = arith.constant 0 : index
    %c0_40 = arith.constant 0 : index
    %473 = vector.load %arg0[%c4_38, %c0_39, %c0_40] : memref<10x8x128xf32, #tpu.memory_space<vmem>>, vector<1x8x128xf32>
    %474 = vector.shape_cast %473 : vector<1x8x128xf32> to vector<8x128xf32>
    %475 = arith.subf %472, %474 : vector<8x128xf32>
    %476 = arith.mulf %475, %475 : vector<8x128xf32>
    %477 = arith.addf %470, %476 : vector<8x128xf32>
    %478 = math.sqrt %477 : vector<8x128xf32>
    %479 = arith.subf %439, %435 : vector<1x1xf32>
    %480 = vector.broadcast %479 : vector<1x1xf32> to vector<8x128xf32>
    %481 = arith.addf %406, %480 : vector<8x128xf32>
    %482 = arith.subf %481, %394 : vector<8x128xf32>
    %483 = arith.subf %441, %437 : vector<1x1xf32>
    %484 = vector.broadcast %483 : vector<1x1xf32> to vector<8x128xf32>
    %485 = arith.addf %408, %484 : vector<8x128xf32>
    %486 = arith.subf %485, %387 : vector<8x128xf32>
    %487 = arith.mulf %482, %482 : vector<8x128xf32>
    %488 = arith.mulf %486, %486 : vector<8x128xf32>
    %489 = arith.addf %487, %488 : vector<8x128xf32>
    %490 = math.sqrt %489 : vector<8x128xf32>
    %491 = arith.mulf %478, %448 : vector<8x128xf32>
    %c2_41 = arith.constant 2 : index
    %c0_42 = arith.constant 0 : index
    %c0_43 = arith.constant 0 : index
    %492 = vector.load %arg0[%c2_41, %c0_42, %c0_43] : memref<10x8x128xf32, #tpu.memory_space<vmem>>, vector<1x8x128xf32>
    %493 = vector.shape_cast %492 : vector<1x8x128xf32> to vector<8x128xf32>
    %c5_44 = arith.constant 5 : index
    %c0_45 = arith.constant 0 : index
    %c0_46 = arith.constant 0 : index
    %494 = vector.load %arg0[%c5_44, %c0_45, %c0_46] : memref<10x8x128xf32, #tpu.memory_space<vmem>>, vector<1x8x128xf32>
    %495 = vector.shape_cast %494 : vector<1x8x128xf32> to vector<8x128xf32>
    %496 = arith.subf %493, %495 : vector<8x128xf32>
    %497 = math.absf %496 : vector<8x128xf32>
    %498 = arith.mulf %497, %448 : vector<8x128xf32>
    %499 = vector.broadcast %5 : f32 to vector<8x128xf32>
    %500 = arith.mulf %464, %499 : vector<8x128xf32>
    %501 = math.tanh %500 : vector<8x128xf32>
    %502 = vector.broadcast %2 : f32 to vector<8x128xf32>
    %503 = arith.mulf %502, %501 : vector<8x128xf32>
    %504 = arith.mulf %503, %448 : vector<8x128xf32>
    %505 = arith.mulf %455, %448 : vector<8x128xf32>
    %506 = arith.mulf %460, %448 : vector<8x128xf32>
    %507 = arith.mulf %490, %16 : vector<8x128xf32>
    %508 = arith.mulf %490, %490 : vector<8x128xf32>
    %509 = arith.mulf %508, %16 : vector<8x128xf32>
    %cst_47 = arith.constant dense<0.000000e+00> : vector<128xf32>
    %510 = vector.multi_reduction <add>, %491, %cst_47 [0] : vector<8x128xf32> to vector<128xf32>
    %511 = vector.shape_cast %510 : vector<128xf32> to vector<1x128xf32>
    %cst_48 = arith.constant dense<0.000000e+00> : vector<128xf32>
    %512 = vector.multi_reduction <add>, %498, %cst_48 [0] : vector<8x128xf32> to vector<128xf32>
    %513 = vector.shape_cast %512 : vector<128xf32> to vector<1x128xf32>
    %cst_49 = arith.constant dense<0.000000e+00> : vector<128xf32>
    %514 = vector.multi_reduction <add>, %504, %cst_49 [0] : vector<8x128xf32> to vector<128xf32>
    %515 = vector.shape_cast %514 : vector<128xf32> to vector<1x128xf32>
    %cst_50 = arith.constant dense<0.000000e+00> : vector<128xf32>
    %516 = vector.multi_reduction <add>, %505, %cst_50 [0] : vector<8x128xf32> to vector<128xf32>
    %517 = vector.shape_cast %516 : vector<128xf32> to vector<1x128xf32>
    %cst_51 = arith.constant dense<0.000000e+00> : vector<128xf32>
    %518 = vector.multi_reduction <add>, %506, %cst_51 [0] : vector<8x128xf32> to vector<128xf32>
    %519 = vector.shape_cast %518 : vector<128xf32> to vector<1x128xf32>
    %cst_52 = arith.constant dense<0.000000e+00> : vector<128xf32>
    %520 = vector.multi_reduction <add>, %507, %cst_52 [0] : vector<8x128xf32> to vector<128xf32>
    %521 = vector.shape_cast %520 : vector<128xf32> to vector<1x128xf32>
    %cst_53 = arith.constant dense<0.000000e+00> : vector<128xf32>
    %522 = vector.multi_reduction <add>, %509, %cst_53 [0] : vector<8x128xf32> to vector<128xf32>
    %523 = vector.shape_cast %522 : vector<128xf32> to vector<1x128xf32>
    %524 = tpu.concatenate %511, %513, %515, %517, %519, %521, %523 in 0 : vector<1x128xf32>, vector<1x128xf32>, vector<1x128xf32>, vector<1x128xf32>, vector<1x128xf32>, vector<1x128xf32>, vector<1x128xf32> -> vector<7x128xf32>
    %cst_54 = arith.constant dense<0.000000e+00> : vector<7xf32>
    %525 = vector.multi_reduction <add>, %524, %cst_54 [1] : vector<7x128xf32> to vector<7xf32>
    %526 = vector.shape_cast %525 : vector<7xf32> to vector<7x1xf32>
    %527 = vector.extract_strided_slice %526 {offsets = [0, 0], sizes = [1, 1], strides = [1, 1]} : vector<7x1xf32> to vector<1x1xf32>
    %528 = vector.extract_strided_slice %526 {offsets = [1, 0], sizes = [1, 1], strides = [1, 1]} : vector<7x1xf32> to vector<1x1xf32>
    %529 = vector.extract_strided_slice %526 {offsets = [2, 0], sizes = [1, 1], strides = [1, 1]} : vector<7x1xf32> to vector<1x1xf32>
    %530 = vector.extract_strided_slice %526 {offsets = [3, 0], sizes = [1, 1], strides = [1, 1]} : vector<7x1xf32> to vector<1x1xf32>
    %531 = vector.extract_strided_slice %526 {offsets = [4, 0], sizes = [1, 1], strides = [1, 1]} : vector<7x1xf32> to vector<1x1xf32>
    %532 = vector.extract_strided_slice %526 {offsets = [5, 0], sizes = [1, 1], strides = [1, 1]} : vector<7x1xf32> to vector<1x1xf32>
    %533 = vector.extract_strided_slice %526 {offsets = [6, 0], sizes = [1, 1], strides = [1, 1]} : vector<7x1xf32> to vector<1x1xf32>
    %534 = vector.broadcast %3 : f32 to vector<1x1xf32>
    %535 = arith.mulf %527, %534 : vector<1x1xf32>
    %536 = vector.broadcast %3 : f32 to vector<1x1xf32>
    %537 = arith.mulf %528, %536 : vector<1x1xf32>
    %538 = vector.broadcast %3 : f32 to vector<1x1xf32>
    %539 = arith.mulf %529, %538 : vector<1x1xf32>
    %540 = vector.broadcast %3 : f32 to vector<1x1xf32>
    %541 = arith.mulf %530, %540 : vector<1x1xf32>
    %542 = arith.mulf %541, %541 : vector<1x1xf32>
    %543 = vector.broadcast %3 : f32 to vector<1x1xf32>
    %544 = arith.mulf %531, %543 : vector<1x1xf32>
    %545 = arith.mulf %544, %544 : vector<1x1xf32>
    %546 = arith.addf %542, %545 : vector<1x1xf32>
    %547 = math.sqrt %546 : vector<1x1xf32>
    %548 = vector.broadcast %3 : f32 to vector<1x1xf32>
    %549 = arith.mulf %532, %548 : vector<1x1xf32>
    %550 = arith.mulf %549, %532 : vector<1x1xf32>
    %551 = arith.subf %533, %550 : vector<1x1xf32>
    %cst_55 = arith.constant 0.000000e+00 : f32
    %552 = vector.broadcast %cst_55 : f32 to vector<1x1xf32>
    %553 = arith.maximumf %551, %552 : vector<1x1xf32>
    %554 = vector.broadcast %4 : f32 to vector<1x1xf32>
    %555 = arith.mulf %553, %554 : vector<1x1xf32>
    %556 = math.sqrt %555 : vector<1x1xf32>
    %cst_56 = arith.constant 5.000000e-01 : f32
    %557 = vector.broadcast %cst_56 : f32 to vector<8x128xf32>
    %558 = arith.cmpf ogt, %448, %557 : vector<8x128xf32>
    %559 = arith.addf %549, %556 : vector<1x1xf32>
    %560 = vector.broadcast %559 : vector<1x1xf32> to vector<8x128xf32>
    %561 = arith.cmpf olt, %490, %560 : vector<8x128xf32>
    %562 = arith.andi %558, %561 : vector<8x128xi1>
    %563 = arith.extui %562 : vector<8x128xi1> to vector<8x128xi32>
    %564 = arith.sitofp %563 : vector<8x128xi32> to vector<8x128xf32>
    %c6_57 = arith.constant 6 : index
    %c0_58 = arith.constant 0 : index
    %c0_59 = arith.constant 0 : index
    %565 = vector.load %arg0[%c6_57, %c0_58, %c0_59] : memref<10x8x128xf32, #tpu.memory_space<vmem>>, vector<1x8x128xf32>
    %566 = vector.shape_cast %565 : vector<1x8x128xf32> to vector<8x128xf32>
    %c7_60 = arith.constant 7 : index
    %c0_61 = arith.constant 0 : index
    %c0_62 = arith.constant 0 : index
    %567 = vector.load %arg0[%c7_60, %c0_61, %c0_62] : memref<10x8x128xf32, #tpu.memory_space<vmem>>, vector<1x8x128xf32>
    %568 = vector.shape_cast %567 : vector<1x8x128xf32> to vector<8x128xf32>
    %569 = arith.mulf %566, %564 : vector<8x128xf32>
    %570 = arith.mulf %568, %564 : vector<8x128xf32>
    %571 = arith.mulf %394, %564 : vector<8x128xf32>
    %572 = arith.mulf %387, %564 : vector<8x128xf32>
    %cst_63 = arith.constant dense<0.000000e+00> : vector<128xf32>
    %573 = vector.multi_reduction <add>, %564, %cst_63 [0] : vector<8x128xf32> to vector<128xf32>
    %574 = vector.shape_cast %573 : vector<128xf32> to vector<1x128xf32>
    %cst_64 = arith.constant dense<0.000000e+00> : vector<128xf32>
    %575 = vector.multi_reduction <add>, %569, %cst_64 [0] : vector<8x128xf32> to vector<128xf32>
    %576 = vector.shape_cast %575 : vector<128xf32> to vector<1x128xf32>
    %cst_65 = arith.constant dense<0.000000e+00> : vector<128xf32>
    %577 = vector.multi_reduction <add>, %570, %cst_65 [0] : vector<8x128xf32> to vector<128xf32>
    %578 = vector.shape_cast %577 : vector<128xf32> to vector<1x128xf32>
    %cst_66 = arith.constant dense<0.000000e+00> : vector<128xf32>
    %579 = vector.multi_reduction <add>, %571, %cst_66 [0] : vector<8x128xf32> to vector<128xf32>
    %580 = vector.shape_cast %579 : vector<128xf32> to vector<1x128xf32>
    %cst_67 = arith.constant dense<0.000000e+00> : vector<128xf32>
    %581 = vector.multi_reduction <add>, %572, %cst_67 [0] : vector<8x128xf32> to vector<128xf32>
    %582 = vector.shape_cast %581 : vector<128xf32> to vector<1x128xf32>
    %583 = tpu.concatenate %574, %576, %578, %580, %582 in 0 : vector<1x128xf32>, vector<1x128xf32>, vector<1x128xf32>, vector<1x128xf32>, vector<1x128xf32> -> vector<5x128xf32>
    %cst_68 = arith.constant dense<0.000000e+00> : vector<5xf32>
    %584 = vector.multi_reduction <add>, %583, %cst_68 [1] : vector<5x128xf32> to vector<5xf32>
    %585 = vector.shape_cast %584 : vector<5xf32> to vector<5x1xf32>
    %586 = vector.extract_strided_slice %585 {offsets = [0, 0], sizes = [1, 1], strides = [1, 1]} : vector<5x1xf32> to vector<1x1xf32>
    %587 = vector.extract_strided_slice %585 {offsets = [1, 0], sizes = [1, 1], strides = [1, 1]} : vector<5x1xf32> to vector<1x1xf32>
    %588 = vector.extract_strided_slice %585 {offsets = [2, 0], sizes = [1, 1], strides = [1, 1]} : vector<5x1xf32> to vector<1x1xf32>
    %589 = vector.extract_strided_slice %585 {offsets = [3, 0], sizes = [1, 1], strides = [1, 1]} : vector<5x1xf32> to vector<1x1xf32>
    %590 = vector.extract_strided_slice %585 {offsets = [4, 0], sizes = [1, 1], strides = [1, 1]} : vector<5x1xf32> to vector<1x1xf32>
    %cst_69 = arith.constant 1.000000e+00 : f32
    %591 = vector.broadcast %cst_69 : f32 to vector<1x1xf32>
    %592 = arith.maximumf %586, %591 : vector<1x1xf32>
    %cst_70 = arith.constant 1.000000e+00 : f32
    %593 = vector.broadcast %cst_70 : f32 to vector<1x1xf32>
    %594 = arith.divf %593, %592 : vector<1x1xf32>
    %595 = arith.mulf %587, %594 : vector<1x1xf32>
    %596 = arith.mulf %588, %594 : vector<1x1xf32>
    %597 = arith.mulf %589, %594 : vector<1x1xf32>
    %598 = arith.mulf %590, %594 : vector<1x1xf32>
    %599 = vector.broadcast %595 : vector<1x1xf32> to vector<8x128xf32>
    %600 = arith.subf %566, %599 : vector<8x128xf32>
    %601 = vector.broadcast %596 : vector<1x1xf32> to vector<8x128xf32>
    %602 = arith.subf %568, %601 : vector<8x128xf32>
    %603 = vector.broadcast %597 : vector<1x1xf32> to vector<8x128xf32>
    %604 = arith.subf %394, %603 : vector<8x128xf32>
    %605 = vector.broadcast %598 : vector<1x1xf32> to vector<8x128xf32>
    %606 = arith.subf %387, %605 : vector<8x128xf32>
    %607 = arith.mulf %600, %600 : vector<8x128xf32>
    %608 = arith.mulf %607, %564 : vector<8x128xf32>
    %609 = arith.mulf %600, %602 : vector<8x128xf32>
    %610 = arith.mulf %609, %564 : vector<8x128xf32>
    %611 = arith.mulf %600, %564 : vector<8x128xf32>
    %612 = arith.mulf %602, %602 : vector<8x128xf32>
    %613 = arith.mulf %612, %564 : vector<8x128xf32>
    %614 = arith.mulf %602, %564 : vector<8x128xf32>
    %615 = arith.mulf %600, %604 : vector<8x128xf32>
    %616 = arith.mulf %615, %564 : vector<8x128xf32>
    %617 = arith.mulf %600, %606 : vector<8x128xf32>
    %618 = arith.mulf %617, %564 : vector<8x128xf32>
    %619 = arith.mulf %602, %604 : vector<8x128xf32>
    %620 = arith.mulf %619, %564 : vector<8x128xf32>
    %cst_71 = arith.constant dense<0.000000e+00> : vector<128xf32>
    %621 = vector.multi_reduction <add>, %608, %cst_71 [0] : vector<8x128xf32> to vector<128xf32>
    %622 = vector.shape_cast %621 : vector<128xf32> to vector<1x128xf32>
    %cst_72 = arith.constant dense<0.000000e+00> : vector<128xf32>
    %623 = vector.multi_reduction <add>, %610, %cst_72 [0] : vector<8x128xf32> to vector<128xf32>
    %624 = vector.shape_cast %623 : vector<128xf32> to vector<1x128xf32>
    %cst_73 = arith.constant dense<0.000000e+00> : vector<128xf32>
    %625 = vector.multi_reduction <add>, %611, %cst_73 [0] : vector<8x128xf32> to vector<128xf32>
    %626 = vector.shape_cast %625 : vector<128xf32> to vector<1x128xf32>
    %cst_74 = arith.constant dense<0.000000e+00> : vector<128xf32>
    %627 = vector.multi_reduction <add>, %613, %cst_74 [0] : vector<8x128xf32> to vector<128xf32>
    %628 = vector.shape_cast %627 : vector<128xf32> to vector<1x128xf32>
    %cst_75 = arith.constant dense<0.000000e+00> : vector<128xf32>
    %629 = vector.multi_reduction <add>, %614, %cst_75 [0] : vector<8x128xf32> to vector<128xf32>
    %630 = vector.shape_cast %629 : vector<128xf32> to vector<1x128xf32>
    %cst_76 = arith.constant dense<0.000000e+00> : vector<128xf32>
    %631 = vector.multi_reduction <add>, %616, %cst_76 [0] : vector<8x128xf32> to vector<128xf32>
    %632 = vector.shape_cast %631 : vector<128xf32> to vector<1x128xf32>
    %cst_77 = arith.constant dense<0.000000e+00> : vector<128xf32>
    %633 = vector.multi_reduction <add>, %618, %cst_77 [0] : vector<8x128xf32> to vector<128xf32>
    %634 = vector.shape_cast %633 : vector<128xf32> to vector<1x128xf32>
    %cst_78 = arith.constant dense<0.000000e+00> : vector<128xf32>
    %635 = vector.multi_reduction <add>, %620, %cst_78 [0] : vector<8x128xf32> to vector<128xf32>
    %636 = vector.shape_cast %635 : vector<128xf32> to vector<1x128xf32>
    %637 = tpu.concatenate %622, %624, %626, %628, %630, %632, %634, %636 in 0 : vector<1x128xf32>, vector<1x128xf32>, vector<1x128xf32>, vector<1x128xf32>, vector<1x128xf32>, vector<1x128xf32>, vector<1x128xf32>, vector<1x128xf32> -> vector<8x128xf32>
    %cst_79 = arith.constant dense<0.000000e+00> : vector<8xf32>
    %638 = vector.multi_reduction <add>, %637, %cst_79 [1] : vector<8x128xf32> to vector<8xf32>
    %639 = vector.shape_cast %638 : vector<8xf32> to vector<8x1xf32>
    %640 = vector.extract_strided_slice %639 {offsets = [0, 0], sizes = [1, 1], strides = [1, 1]} : vector<8x1xf32> to vector<1x1xf32>
    %641 = vector.extract_strided_slice %639 {offsets = [1, 0], sizes = [1, 1], strides = [1, 1]} : vector<8x1xf32> to vector<1x1xf32>
    %642 = vector.extract_strided_slice %639 {offsets = [2, 0], sizes = [1, 1], strides = [1, 1]} : vector<8x1xf32> to vector<1x1xf32>
    %643 = vector.extract_strided_slice %639 {offsets = [3, 0], sizes = [1, 1], strides = [1, 1]} : vector<8x1xf32> to vector<1x1xf32>
    %644 = vector.extract_strided_slice %639 {offsets = [4, 0], sizes = [1, 1], strides = [1, 1]} : vector<8x1xf32> to vector<1x1xf32>
    %645 = vector.extract_strided_slice %639 {offsets = [5, 0], sizes = [1, 1], strides = [1, 1]} : vector<8x1xf32> to vector<1x1xf32>
    %646 = vector.extract_strided_slice %639 {offsets = [6, 0], sizes = [1, 1], strides = [1, 1]} : vector<8x1xf32> to vector<1x1xf32>
    %647 = vector.extract_strided_slice %639 {offsets = [7, 0], sizes = [1, 1], strides = [1, 1]} : vector<8x1xf32> to vector<1x1xf32>
    %648 = arith.mulf %602, %606 : vector<8x128xf32>
    %649 = arith.mulf %648, %564 : vector<8x128xf32>
    %650 = arith.mulf %604, %564 : vector<8x128xf32>
    %651 = arith.mulf %606, %564 : vector<8x128xf32>
    %cst_80 = arith.constant dense<0.000000e+00> : vector<128xf32>
    %652 = vector.multi_reduction <add>, %649, %cst_80 [0] : vector<8x128xf32> to vector<128xf32>
    %653 = vector.shape_cast %652 : vector<128xf32> to vector<1x128xf32>
    %cst_81 = arith.constant dense<0.000000e+00> : vector<128xf32>
    %654 = vector.multi_reduction <add>, %650, %cst_81 [0] : vector<8x128xf32> to vector<128xf32>
    %655 = vector.shape_cast %654 : vector<128xf32> to vector<1x128xf32>
    %cst_82 = arith.constant dense<0.000000e+00> : vector<128xf32>
    %656 = vector.multi_reduction <add>, %651, %cst_82 [0] : vector<8x128xf32> to vector<128xf32>
    %657 = vector.shape_cast %656 : vector<128xf32> to vector<1x128xf32>
    %658 = tpu.concatenate %653, %655, %657 in 0 : vector<1x128xf32>, vector<1x128xf32>, vector<1x128xf32> -> vector<3x128xf32>
    %cst_83 = arith.constant dense<0.000000e+00> : vector<3xf32>
    %659 = vector.multi_reduction <add>, %658, %cst_83 [1] : vector<3x128xf32> to vector<3xf32>
    %660 = vector.shape_cast %659 : vector<3xf32> to vector<3x1xf32>
    %661 = vector.extract_strided_slice %660 {offsets = [0, 0], sizes = [1, 1], strides = [1, 1]} : vector<3x1xf32> to vector<1x1xf32>
    %662 = vector.extract_strided_slice %660 {offsets = [1, 0], sizes = [1, 1], strides = [1, 1]} : vector<3x1xf32> to vector<1x1xf32>
    %663 = vector.extract_strided_slice %660 {offsets = [2, 0], sizes = [1, 1], strides = [1, 1]} : vector<3x1xf32> to vector<1x1xf32>
    %664 = arith.mulf %643, %586 : vector<1x1xf32>
    %665 = arith.mulf %644, %644 : vector<1x1xf32>
    %666 = arith.subf %664, %665 : vector<1x1xf32>
    %667 = arith.mulf %644, %642 : vector<1x1xf32>
    %668 = arith.mulf %641, %586 : vector<1x1xf32>
    %669 = arith.subf %667, %668 : vector<1x1xf32>
    %670 = arith.mulf %641, %644 : vector<1x1xf32>
    %671 = arith.mulf %643, %642 : vector<1x1xf32>
    %672 = arith.subf %670, %671 : vector<1x1xf32>
    %673 = arith.mulf %642, %644 : vector<1x1xf32>
    %674 = arith.mulf %641, %586 : vector<1x1xf32>
    %675 = arith.subf %673, %674 : vector<1x1xf32>
    %676 = arith.mulf %640, %586 : vector<1x1xf32>
    %677 = arith.mulf %642, %642 : vector<1x1xf32>
    %678 = arith.subf %676, %677 : vector<1x1xf32>
    %679 = arith.mulf %641, %642 : vector<1x1xf32>
    %680 = arith.mulf %640, %644 : vector<1x1xf32>
    %681 = arith.subf %679, %680 : vector<1x1xf32>
    %682 = arith.mulf %641, %644 : vector<1x1xf32>
    %683 = arith.mulf %642, %643 : vector<1x1xf32>
    %684 = arith.subf %682, %683 : vector<1x1xf32>
    %685 = arith.mulf %642, %641 : vector<1x1xf32>
    %686 = arith.mulf %640, %644 : vector<1x1xf32>
    %687 = arith.subf %685, %686 : vector<1x1xf32>
    %688 = arith.mulf %640, %643 : vector<1x1xf32>
    %689 = arith.mulf %641, %641 : vector<1x1xf32>
    %690 = arith.subf %688, %689 : vector<1x1xf32>
    %691 = arith.mulf %640, %666 : vector<1x1xf32>
    %692 = arith.mulf %641, %669 : vector<1x1xf32>
    %693 = arith.addf %691, %692 : vector<1x1xf32>
    %694 = arith.mulf %642, %672 : vector<1x1xf32>
    %695 = arith.addf %693, %694 : vector<1x1xf32>
    %696 = math.absf %695 : vector<1x1xf32>
    %697 = arith.mulf %640, %643 : vector<1x1xf32>
    %698 = arith.mulf %697, %586 : vector<1x1xf32>
    %699 = math.absf %698 : vector<1x1xf32>
    %cst_84 = arith.constant 1.000000e-30 : f32
    %700 = vector.broadcast %cst_84 : f32 to vector<1x1xf32>
    %701 = arith.maximumf %699, %700 : vector<1x1xf32>
    %cst_85 = arith.constant 9.99999997E-7 : f32
    %702 = vector.broadcast %cst_85 : f32 to vector<1x1xf32>
    %703 = arith.mulf %702, %701 : vector<1x1xf32>
    %704 = arith.cmpf ogt, %696, %703 : vector<1x1xf32>
    %cst_86 = arith.constant 1.000000e+00 : f32
    %705 = vector.broadcast %cst_86 : f32 to vector<1x1xf32>
    %706 = arith.select %704, %695, %705 : vector<1x1xi1>, vector<1x1xf32>
    %cst_87 = arith.constant 1.000000e+00 : f32
    %707 = vector.broadcast %cst_87 : f32 to vector<1x1xf32>
    %708 = arith.divf %707, %706 : vector<1x1xf32>
    %cst_88 = arith.constant 0.000000e+00 : f32
    %709 = vector.broadcast %cst_88 : f32 to vector<1x1xf32>
    %710 = arith.select %704, %708, %709 : vector<1x1xi1>, vector<1x1xf32>
    %711 = arith.mulf %666, %710 : vector<1x1xf32>
    %712 = arith.mulf %675, %710 : vector<1x1xf32>
    %713 = arith.mulf %684, %710 : vector<1x1xf32>
    %714 = arith.mulf %669, %710 : vector<1x1xf32>
    %715 = arith.mulf %678, %710 : vector<1x1xf32>
    %716 = arith.mulf %687, %710 : vector<1x1xf32>
    %717 = arith.mulf %672, %710 : vector<1x1xf32>
    %718 = arith.mulf %681, %710 : vector<1x1xf32>
    %719 = arith.mulf %690, %710 : vector<1x1xf32>
    %720 = arith.mulf %711, %645 : vector<1x1xf32>
    %721 = arith.mulf %712, %647 : vector<1x1xf32>
    %722 = arith.addf %720, %721 : vector<1x1xf32>
    %723 = arith.mulf %713, %662 : vector<1x1xf32>
    %724 = arith.addf %722, %723 : vector<1x1xf32>
    %725 = arith.mulf %711, %646 : vector<1x1xf32>
    %726 = arith.mulf %712, %661 : vector<1x1xf32>
    %727 = arith.addf %725, %726 : vector<1x1xf32>
    %728 = arith.mulf %713, %663 : vector<1x1xf32>
    %729 = arith.addf %727, %728 : vector<1x1xf32>
    %730 = arith.mulf %714, %645 : vector<1x1xf32>
    %731 = arith.mulf %715, %647 : vector<1x1xf32>
    %732 = arith.addf %730, %731 : vector<1x1xf32>
    %733 = arith.mulf %716, %662 : vector<1x1xf32>
    %734 = arith.addf %732, %733 : vector<1x1xf32>
    %735 = arith.mulf %714, %646 : vector<1x1xf32>
    %736 = arith.mulf %715, %661 : vector<1x1xf32>
    %737 = arith.addf %735, %736 : vector<1x1xf32>
    %738 = arith.mulf %716, %663 : vector<1x1xf32>
    %739 = arith.addf %737, %738 : vector<1x1xf32>
    %740 = arith.mulf %717, %645 : vector<1x1xf32>
    %741 = arith.mulf %718, %647 : vector<1x1xf32>
    %742 = arith.addf %740, %741 : vector<1x1xf32>
    %743 = arith.mulf %719, %662 : vector<1x1xf32>
    %744 = arith.addf %742, %743 : vector<1x1xf32>
    %745 = arith.mulf %717, %646 : vector<1x1xf32>
    %746 = arith.mulf %718, %661 : vector<1x1xf32>
    %747 = arith.addf %745, %746 : vector<1x1xf32>
    %748 = arith.mulf %719, %663 : vector<1x1xf32>
    %749 = arith.addf %747, %748 : vector<1x1xf32>
    %750 = vector.broadcast %724 : vector<1x1xf32> to vector<8x128xf32>
    %751 = arith.mulf %600, %750 : vector<8x128xf32>
    %752 = vector.broadcast %734 : vector<1x1xf32> to vector<8x128xf32>
    %753 = arith.mulf %602, %752 : vector<8x128xf32>
    %754 = arith.addf %751, %753 : vector<8x128xf32>
    %755 = vector.broadcast %744 : vector<1x1xf32> to vector<8x128xf32>
    %756 = arith.addf %754, %755 : vector<8x128xf32>
    %757 = vector.broadcast %597 : vector<1x1xf32> to vector<8x128xf32>
    %758 = arith.addf %756, %757 : vector<8x128xf32>
    %759 = vector.broadcast %729 : vector<1x1xf32> to vector<8x128xf32>
    %760 = arith.mulf %600, %759 : vector<8x128xf32>
    %761 = vector.broadcast %739 : vector<1x1xf32> to vector<8x128xf32>
    %762 = arith.mulf %602, %761 : vector<8x128xf32>
    %763 = arith.addf %760, %762 : vector<8x128xf32>
    %764 = vector.broadcast %749 : vector<1x1xf32> to vector<8x128xf32>
    %765 = arith.addf %763, %764 : vector<8x128xf32>
    %766 = vector.broadcast %598 : vector<1x1xf32> to vector<8x128xf32>
    %767 = arith.addf %765, %766 : vector<8x128xf32>
    %768 = arith.subf %758, %566 : vector<8x128xf32>
    %769 = arith.mulf %768, %768 : vector<8x128xf32>
    %770 = arith.subf %767, %568 : vector<8x128xf32>
    %771 = arith.mulf %770, %770 : vector<8x128xf32>
    %772 = arith.addf %769, %771 : vector<8x128xf32>
    %773 = math.sqrt %772 : vector<8x128xf32>
    %774 = arith.mulf %773, %564 : vector<8x128xf32>
    %cst_89 = arith.constant dense<0.000000e+00> : vector<128xf32>
    %775 = vector.multi_reduction <add>, %774, %cst_89 [0] : vector<8x128xf32> to vector<128xf32>
    %776 = vector.shape_cast %775 : vector<128xf32> to vector<1x128xf32>
    %cst_90 = arith.constant dense<0.000000e+00> : vector<1xf32>
    %777 = vector.multi_reduction <add>, %776, %cst_90 [1] : vector<1x128xf32> to vector<1xf32>
    %778 = vector.shape_cast %777 : vector<1xf32> to vector<1x1xf32>
    %cst_91 = arith.constant 3.000000e+00 : f32
    %779 = vector.broadcast %cst_91 : f32 to vector<1x1xf32>
    %780 = arith.cmpf oge, %586, %779 : vector<1x1xf32>
    %781 = arith.andi %704, %780 : vector<1x1xi1>
    %782 = arith.mulf %778, %594 : vector<1x1xf32>
    %cst_92 = arith.constant 0.000000e+00 : f32
    %783 = vector.broadcast %cst_92 : f32 to vector<1x1xf32>
    %784 = arith.select %781, %782, %783 : vector<1x1xi1>, vector<1x1xf32>
    %cst_93 = arith.constant 1.000000e+01 : f32
    %785 = vector.broadcast %cst_93 : f32 to vector<1x1xf32>
    %786 = arith.mulf %537, %785 : vector<1x1xf32>
    %787 = arith.addf %535, %786 : vector<1x1xf32>
    %788 = arith.addf %787, %539 : vector<1x1xf32>
    %789 = arith.addf %788, %547 : vector<1x1xf32>
    %790 = arith.addf %789, %784 : vector<1x1xf32>
    %791 = tpu.iota {dimensions = array<i32: 1>} : vector<1x128xi32>
    %c0_i32 = arith.constant 0 : i32
    %792 = vector.broadcast %c0_i32 : i32 to vector<1x128xi32>
    %793 = arith.cmpi eq, %791, %792 : vector<1x128xi32>
    %cst_94 = arith.constant 0.000000e+00 : f32
    %794 = vector.shape_cast %790 : vector<1x1xf32> to vector<1x1xf32>
    %795 = vector.broadcast %794 : vector<1x1xf32> to vector<1x128xf32>
    %796 = vector.broadcast %cst_94 : f32 to vector<1x128xf32>
    %797 = arith.select %793, %795, %796 : vector<1x128xi1>, vector<1x128xf32>
    %c1_i32 = arith.constant 1 : i32
    %798 = vector.broadcast %c1_i32 : i32 to vector<1x128xi32>
    %799 = arith.cmpi eq, %791, %798 : vector<1x128xi32>
    %cst_95 = arith.constant 0.000000e+00 : f32
    %800 = vector.shape_cast %535 : vector<1x1xf32> to vector<1x1xf32>
    %801 = vector.broadcast %800 : vector<1x1xf32> to vector<1x128xf32>
    %802 = vector.broadcast %cst_95 : f32 to vector<1x128xf32>
    %803 = arith.select %799, %801, %802 : vector<1x128xi1>, vector<1x128xf32>
    %804 = arith.addf %797, %803 : vector<1x128xf32>
    %c2_i32 = arith.constant 2 : i32
    %805 = vector.broadcast %c2_i32 : i32 to vector<1x128xi32>
    %806 = arith.cmpi eq, %791, %805 : vector<1x128xi32>
    %cst_96 = arith.constant 0.000000e+00 : f32
    %807 = vector.shape_cast %537 : vector<1x1xf32> to vector<1x1xf32>
    %808 = vector.broadcast %807 : vector<1x1xf32> to vector<1x128xf32>
    %809 = vector.broadcast %cst_96 : f32 to vector<1x128xf32>
    %810 = arith.select %806, %808, %809 : vector<1x128xi1>, vector<1x128xf32>
    %811 = arith.addf %804, %810 : vector<1x128xf32>
    %c3_i32 = arith.constant 3 : i32
    %812 = vector.broadcast %c3_i32 : i32 to vector<1x128xi32>
    %813 = arith.cmpi eq, %791, %812 : vector<1x128xi32>
    %cst_97 = arith.constant 0.000000e+00 : f32
    %814 = vector.shape_cast %539 : vector<1x1xf32> to vector<1x1xf32>
    %815 = vector.broadcast %814 : vector<1x1xf32> to vector<1x128xf32>
    %816 = vector.broadcast %cst_97 : f32 to vector<1x128xf32>
    %817 = arith.select %813, %815, %816 : vector<1x128xi1>, vector<1x128xf32>
    %818 = arith.addf %811, %817 : vector<1x128xf32>
    %c4_i32 = arith.constant 4 : i32
    %819 = vector.broadcast %c4_i32 : i32 to vector<1x128xi32>
    %820 = arith.cmpi eq, %791, %819 : vector<1x128xi32>
    %cst_98 = arith.constant 0.000000e+00 : f32
    %821 = vector.shape_cast %547 : vector<1x1xf32> to vector<1x1xf32>
    %822 = vector.broadcast %821 : vector<1x1xf32> to vector<1x128xf32>
    %823 = vector.broadcast %cst_98 : f32 to vector<1x128xf32>
    %824 = arith.select %820, %822, %823 : vector<1x128xi1>, vector<1x128xf32>
    %825 = arith.addf %818, %824 : vector<1x128xf32>
    %c5_i32 = arith.constant 5 : i32
    %826 = vector.broadcast %c5_i32 : i32 to vector<1x128xi32>
    %827 = arith.cmpi eq, %791, %826 : vector<1x128xi32>
    %cst_99 = arith.constant 0.000000e+00 : f32
    %828 = vector.shape_cast %784 : vector<1x1xf32> to vector<1x1xf32>
    %829 = vector.broadcast %828 : vector<1x1xf32> to vector<1x128xf32>
    %830 = vector.broadcast %cst_99 : f32 to vector<1x128xf32>
    %831 = arith.select %827, %829, %830 : vector<1x128xi1>, vector<1x128xf32>
    %832 = arith.addf %825, %831 : vector<1x128xf32>
    %c0_100 = arith.constant 0 : index
    %c0_101 = arith.constant 0 : index
    %833 = vector.load %arg2[%c0_100, %c0_101] : memref<1x128xf32, #tpu.memory_space<vmem>>, vector<1x128xf32>
    tpu.vector_store %arg2[%c0_100, %c0_101], %832 {strides = array<i32>} : memref<1x128xf32, #tpu.memory_space<vmem>>, vector<1x128xf32>,
    return
  }
}

</mosaic_0001>

<bundles_post_ra>
// kernel: tpu_custom_call.1
= control target key start
LH: loop header
LB: loop body
LE: loop exit
PB: predicated region body
PF: predicated region fallthrough
CT: control target
= control target key end

     0   :  { %7 = vsyncpa [#allocation3], 0  ;;  %s1973_s0 = inlined_call_operand.hbm [shape: f32[10,8,128], index: 0, kind: input, shape index: {}]   ;;  %s1974_s1 = inlined_call_operand.vmem [shape: f32[104], index: 1, kind: input, shape index: {}]   ;;  %s1975_s2 = inlined_call_operand.hbm [shape: f32[1,128], index: 2, kind: output, shape index: {}]  }
   0x1   :  { %8 = vsyncpa [#allocation5], 0 }
   0x2   :  { %9 = vsyncpa [#allocation4], 0  ;;  %s1370_s9 = smov [#allocation2]   ;;  %s28_s13 = sshll.u32 %s1974_s1, 4  ;;  %s29_s13 = int_to_ptr.vmem [resolvable:$true] %s28_s13 }
   0x3   :  { %s15_s10 = sshll.u32 %s1370_s9, 4  ;;  %s16_s10 = int_to_ptr.vmem [resolvable:$true] %s15_s10 }
   0x4   :  { %s1320_s14 = scalar_lea.vmem %s16_s10, 1280  ;;  %p1325_p1 = scmp.lt.s32.totalorder %s16_s10, %s16_s10 }
   0x5   :  { %p1321_p0 = scmp.ne.s32.totalorder %s16_s10, %s1320_s14  ;;  %p1326_p2 = scmp.lt.s32.totalorder %s1320_s14, %s1320_s14 }
   0x7   :  { %p1327_p3 = por %p1326_p2, %p1325_p1 }
   0x9   :  { %p1328_p4 = pnand %p1327_p3, %p1321_p0 }
   0xb   :  { %1331 = shalt.err (!%p1328_p4)
}
   0xc   :  { %s1371_s15 = smov 128   ;;  %s1372_s16 = smov 8  }
   0xd   :  { %21 = dma.hbm_to_vmem [thread:$0]  %s1973_s0, 1280, %s16_s10, [#allocation3], %s1371_s15, %s1371_s15, %s1372_s16  }
   0xe   :  { %s1332_s19 = scalar_lea.vmem %s29_s13, 16  ;;  %p1337_p6 = scmp.lt.s32.totalorder %s29_s13, %s29_s13 }
   0xf   :  { %p1333_p5 = scmp.ne.s32.totalorder %s29_s13, %s1332_s19  ;;  %p1338_p7 = scmp.lt.s32.totalorder %s1332_s19, %s1332_s19 }
  0x11   :  { %p1339_p8 = por %p1338_p7, %p1337_p6 }
  0x13   :  { %p1340_p9 = pnand %p1339_p8, %p1333_p5 }
  0x15   :  { %1343 = shalt.err (!%p1340_p9)
}
  0x16   :  { %s1373_s1 = smov [#allocation6]  }
  0x17   :  { %31 = dma.vmem_to_smem %s29_s13, 16, %s1373_s1, [#allocation5]  }
  0x18   :  { %1364 = dma.done.wait [#allocation3], 1280  }
  0x19   :  { %1365 = vsyncadd [#allocation3], 4294966016 }
  0x1a   :  { %1366 = dma.done.wait [#allocation5], 16  }
  0x1b   :  { %1367 = vsyncadd [#allocation5], 4294967280 }
  0x1c   :  { %38 = sfence }
  0x1d   :  { %s1158_s20 = sld [smem:[#allocation6 + $0x8]]  ;;  %v1398_v0 = vld [vmem:[#allocation2 + $0x8] sm:$0xff]  ;;  %v58_v4 = vld [vmem:[#allocation2 + $0x40] sm:$0xff]  ;;  %v1409_v10 = vld [vmem:[#allocation2 + $0x10] sm:$0xff]  ;;  %vm479_vm3 = vcmask 1040384   ;;  %vm481_vm4 = vcmask 1041408  }
  0x1e   :  { %s1160_s21 = sld [smem:[#allocation6 + $0xa]]  ;;  %v61_v1 = vmul.f32 8.983153e-06, %v1398_v0  ;;  %vm483_vm5 = vcmask 1042432   ;;  %vm485_vm6 = vcmask 1043456   ;;  %vm487_vm7 = vcmask 1044480  }
  0x1f   :  { %s1161_s0 = sld [smem:[#allocation6 + $0xb]]  ;;  %vm627_vm14 = vcmask 1045504   ;;  %vm629_vm15 = vcmask 1046528  }
  0x20   :  { %s1159_s22 = sld [smem:[#allocation6 + $0x9]] }
  0x21   :  { %s1162_s23 = sld [smem:[#allocation6 + $0xc]] }
  0x22   :  { %s1401_s24 = sld [smem:[#allocation6 + $0xd]] }
  0x23   :  { %s1165_s25 = sld [smem:[#allocation6 + $0x2c]]  ;;  %v63_v5 = vstv %s1158_s20 }
  0x24   :  { %v69_v2 = vstv %s1160_s21  ;;  %s1403_s26 = sld [smem:[#allocation6 + $0x54]]  ;;  %v64_v7 = vsub.f32 %v58_v4, %v63_v5 }
  0x25   :  { %v70_v3 = vsub.f32 %v61_v1, %v69_v2  ;;  %v72_v6 = vstv %s1161_s0  ;;  %s1169_s27 = sld [smem:[#allocation6 + $0x2d]] }
  0x26   :  { %s1171_s28 = sld [smem:[#allocation6 + $0x55]]  ;;  %v66_v9 = vstv %s1159_s22 }
  0x27   :  { %s1405_s29 = sld [smem:[#allocation6]]  ;;  %v1407_v8 = vmul.f32 %v72_v6, %v70_v3  ;;  %v77_v11 = vstv %s1162_s23  ;;  %v1413_v14 = vmul.f32 %v66_v9, %v64_v7 }
  0x28   :  { %s1173_s30 = sld [smem:[#allocation6 + $0x2e]]  ;;  %v78_v15 = vsub.f32 %v1409_v10, %v77_v11  ;;  %v80_v17 = vstv %s1401_s24 }
  0x29   :  { %s1411_s3 = sld [smem:[#allocation6 + $0x6]]  ;;  %v85_v12 = vstv %s1165_s25  ;;  %v1437_v32 = vmul.f32 %v1407_v8, %v1413_v14  ;;  %v1494_v11 = vmul.f32 %v1407_v8, %v1407_v8 }
  0x2a   :  { %s1175_s4 = sld [smem:[#allocation6 + $0x56]]  ;;  %v89_v18 = vstv %s1403_s26  ;;  %v1424_v23 = vmul.f32 %v80_v17, %v78_v15 }
  0x2b   :  { %v95_v13 = vstv %s1169_s27  ;;  %s1416_s5 = sld [smem:[#allocation6 + $0x18]] }
  0x2c   :  { %v96_v16 = vmul.f32 %v95_v13, %v1407_v8  ;;  %v103_v19 = vstv %s1171_s28  ;;  %s1177_s6 = sld [smem:[#allocation6 + $0x2f]]  ;;  %v1447_v39 = vmul.f32 %v1424_v23, %v1407_v8  ;;  %v1462_v49 = vmul.f32 %v1424_v23, %v1413_v14 }
  0x2d   :  { %s1421_s7 = sld [smem:[#allocation6 + $0x40]]  ;;  %v104_v21 = vmul.f32 %v103_v19, %v1407_v8  ;;  %v1476_v59 = vmul.f32 %v1437_v32, %v1424_v23 }
  0x2e   :  { %v97_v20 = vadd.f32 %v96_v16, %v85_v12  ;;  %v111_v22 = vstv %s1173_s30  ;;  %s1179_s8 = sld [smem:[#allocation6 + $0x57]] }
  0x2f   :  { %s1426_s9 = sld [smem:[#allocation6 + $0x19]]  ;;  %v105_v24 = vadd.f32 %v104_v21, %v89_v18  ;;  %v112_v25 = vmul.f32 %v111_v22, %v1413_v14 }
  0x30   :  { %v119_v26 = vstv %s1175_s4  ;;  %s1181_s10 = sld [smem:[#allocation6 + $0x30]] }
  0x31   :  { %s1429_s11 = sld [smem:[#allocation6 + $0x41]]  ;;  %v113_v27 = vadd.f32 %v112_v25, %v97_v20  ;;  %v120_v28 = vmul.f32 %v119_v26, %v1413_v14  ;;  %v83_v50 = vstv %s1416_s5  ;;  %v1510_v25 = vmul.f32 %v1413_v14, %v1413_v14 }
  0x32   :  { %v127_v29 = vstv %s1177_s6  ;;  %s1183_s12 = sld [smem:[#allocation6 + $0x58]] }
  0x33   :  { %s1432_s13 = sld [smem:[#allocation6 + $0x1a]]  ;;  %v121_v30 = vadd.f32 %v120_v28, %v105_v24  ;;  %v128_v31 = vmul.f32 %v127_v29, %v1424_v23  ;;  %v87_v56 = vstv %s1421_s7 }
  0x34   :  { %v135_v33 = vstv %s1179_s8  ;;  %s1185_s14 = sld [smem:[#allocation6 + $0x31]] }
  0x35   :  { %s1439_s15 = sld [smem:[#allocation6 + $0x42]]  ;;  %v129_v34 = vadd.f32 %v128_v31, %v113_v27  ;;  %v136_v35 = vmul.f32 %v135_v33, %v1424_v23  ;;  %v91_v40 = vstv %s1426_s9 }
  0x36   :  { %v144_v36 = vstv %s1181_s10  ;;  %s1187_s16 = sld [smem:[#allocation6 + $0x59]]  ;;  %v92_v46 = vmul.f32 %v91_v40, %v1407_v8  ;;  %v1527_v40 = vmul.f32 %v1424_v23, %v1424_v23 }
  0x37   :  { %s1442_s17 = sld [smem:[#allocation6 + $0x1b]]  ;;  %v137_v37 = vadd.f32 %v136_v35, %v121_v30  ;;  %v145_v38 = vmul.f32 %v144_v36, %v1437_v32  ;;  %v99_v44 = vstv %s1429_s11 }
  0x38   :  { %v152_v41 = vstv %s1183_s12  ;;  %s1189_s18 = sld [smem:[#allocation6 + $0x32]]  ;;  %v100_v53 = vmul.f32 %v99_v44, %v1407_v8  ;;  %v93_v60 = vadd.f32 %v92_v46, %v83_v50 }
  0x39   :  { %s1450_s19 = sld [smem:[#allocation6 + $0x43]]  ;;  %v146_v42 = vadd.f32 %v145_v38, %v129_v34  ;;  %v153_v43 = vmul.f32 %v152_v41, %v1437_v32  ;;  %v107_v51 = vstv %s1432_s13 }
  0x3a   :  { %v161_v45 = vstv %s1185_s14  ;;  %s1454_s1 = sld [smem:[#allocation6 + $0x5a]]  ;;  %v108_v61 = vmul.f32 %v107_v51, %v1413_v14  ;;  %v101_v3 = vadd.f32 %v100_v53, %v87_v56 }
  0x3b   :  { %s1457_s20 = sld [smem:[#allocation6 + $0x1c]]  ;;  %v154_v47 = vadd.f32 %v153_v43, %v137_v37  ;;  %v162_v48 = vmul.f32 %v161_v45, %v1447_v39  ;;  %v115_v57 = vstv %s1439_s15 }
  0x3c   :  { %v169_v52 = vstv %s1187_s16  ;;  %s1466_s21 = sld [smem:[#allocation6 + $0x36]]  ;;  %v116_v4 = vmul.f32 %v115_v57, %v1413_v14  ;;  %v109_v12 = vadd.f32 %v108_v61, %v93_v60 }
  0x3d   :  { %s1469_s0 = sld [smem:[#allocation6 + $0x44]]  ;;  %v163_v54 = vadd.f32 %v162_v48, %v146_v42  ;;  %v170_v55 = vmul.f32 %v169_v52, %v1447_v39  ;;  %v123_v1 = vstv %s1442_s17 }
  0x3e   :  { %v178_v58 = vstv %s1189_s18  ;;  %s1195_s22 = sld [smem:[#allocation6 + $0x5e]]  ;;  %v124_v13 = vmul.f32 %v123_v1, %v1424_v23  ;;  %v117_v19 = vadd.f32 %v116_v4, %v101_v3  ;;  %v1562_v4 = vmul.f32 %v1510_v25, %v1407_v8 }
  0x3f   :  { %s1479_s23 = sld [smem:[#allocation6 + $0x1d]]  ;;  %v171_v62 = vadd.f32 %v170_v55, %v154_v47  ;;  %v179_v63 = vmul.f32 %v178_v58, %v1462_v49  ;;  %v131_v7 = vstv %s1450_s19 }
  0x40   :  { %v186_v2 = vstv %s1454_s1  ;;  %s1484_s24 = sld [smem:[#allocation6 + $0x33]]  ;;  %v132_v20 = vmul.f32 %v131_v7, %v1424_v23  ;;  %v125_v27 = vadd.f32 %v124_v13, %v109_v12 }
  0x41   :  { %s1487_s25 = sld [smem:[#allocation6 + $0x45]]  ;;  %v180_v5 = vadd.f32 %v179_v63, %v163_v54  ;;  %v187_v6 = vmul.f32 %v186_v2, %v1462_v49  ;;  %v140_v17 = vstv %s1457_s20  ;;  %v1545_v54 = vmul.f32 %v1494_v11, %v1407_v8 }
  0x42   :  { %v195_v9 = vstv %s1466_s21  ;;  %s1199_s26 = sld [smem:[#allocation6 + $0x5b]]  ;;  %v141_v28 = vmul.f32 %v140_v17, %v1437_v32  ;;  %v133_v34 = vadd.f32 %v132_v20, %v117_v19  ;;  %v1579_v20 = vmul.f32 %v1527_v40, %v1407_v8 }
  0x43   :  { %s1497_s27 = sld [smem:[#allocation6 + $0x1e]]  ;;  %v188_v15 = vadd.f32 %v187_v6, %v171_v62  ;;  %v196_v16 = vmul.f32 %v195_v9, %v1476_v59  ;;  %v148_v24 = vstv %s1469_s0 }
  0x44   :  { %v203_v18 = vstv %s1195_s22  ;;  %s1501_s28 = sld [smem:[#allocation6 + $0x34]]  ;;  %v149_v35 = vmul.f32 %v148_v24, %v1437_v32  ;;  %v142_v42 = vadd.f32 %v141_v28, %v125_v27 }
  0x45   :  { %s1504_s30 = sld [smem:[#allocation6 + $0x46]]  ;;  %v197_v21 = vadd.f32 %v196_v16, %v180_v5  ;;  %v204_v22 = vmul.f32 %v203_v18, %v1476_v59  ;;  %v157_v31 = vstv %s1479_s23 }
  0x46   :  { %v214_v26 = vstv %s1484_s24  ;;  %s1203_s4 = sld [smem:[#allocation6 + $0x5c]]  ;;  %v158_v43 = vmul.f32 %v157_v31, %v1447_v39  ;;  %v150_v47 = vadd.f32 %v149_v35, %v133_v34  ;;  %v1596_v34 = vmul.f32 %v1494_v11, %v1413_v14 }
  0x47   :  { %s1514_s5 = sld [smem:[#allocation6 + $0x22]]  ;;  %v205_v29 = vadd.f32 %v204_v22, %v188_v15  ;;  %v215_v30 = vmul.f32 %v214_v26, %v1494_v11  ;;  %v165_v38 = vstv %s1487_s25 }
  0x48   :  { %v222_v33 = vstv %s1199_s26  ;;  %s1518_s6 = sld [smem:[#allocation6 + $0x35]]  ;;  %v166_v48 = vmul.f32 %v165_v38, %v1447_v39  ;;  %v159_v55 = vadd.f32 %v158_v43, %v142_v42 }
  0x49   :  { %s1521_s7 = sld [smem:[#allocation6 + $0x4a]]  ;;  %v216_v36 = vadd.f32 %v215_v30, %v197_v21  ;;  %v223_v37 = vmul.f32 %v222_v33, %v1494_v11  ;;  %v174_v45 = vstv %s1497_s27 }
  0x4a   :  { %v230_v41 = vstv %s1501_s28  ;;  %s1207_s8 = sld [smem:[#allocation6 + $0x5d]]  ;;  %v175_v56 = vmul.f32 %v174_v45, %v1462_v49  ;;  %v167_v61 = vadd.f32 %v166_v48, %v150_v47  ;;  %v1613_v48 = vmul.f32 %v1510_v25, %v1413_v14 }
  0x4b   :  { %s1531_s9 = sld [smem:[#allocation6 + $0x1f]]  ;;  %v224_v32 = vadd.f32 %v223_v37, %v205_v29  ;;  %v231_v44 = vmul.f32 %v230_v41, %v1510_v25  ;;  %v182_v52 = vstv %s1504_s30 }
  0x4c   :  { %v238_v46 = vstv %s1203_s4  ;;  %s1535_s10 = sld [smem:[#allocation6 + $0x37]]  ;;  %v183_v62 = vmul.f32 %v182_v52, %v1462_v49  ;;  %v176_v5 = vadd.f32 %v175_v56, %v159_v55 }
  0x4d   :  { %s1538_s11 = sld [smem:[#allocation6 + $0x47]]  ;;  %v232_v50 = vadd.f32 %v231_v44, %v216_v36  ;;  %v239_v51 = vmul.f32 %v238_v46, %v1510_v25  ;;  %v191_v58 = vstv %s1514_s5 }
  0x4e   :  { %v246_v53 = vstv %s1518_s6  ;;  %s1211_s12 = sld [smem:[#allocation6 + $0x5f]]  ;;  %v192_v6 = vmul.f32 %v191_v58, %v1476_v59  ;;  %v184_v13 = vadd.f32 %v183_v62, %v167_v61 }
  0x4f   :  { %s1548_s13 = sld [smem:[#allocation6 + $0x20]]  ;;  %v240_v39 = vadd.f32 %v239_v51, %v224_v32  ;;  %v247_v57 = vmul.f32 %v246_v53, %v1527_v40  ;;  %v199_v2 = vstv %s1521_s7 }
  0x50   :  { %v254_v60 = vstv %s1207_s8  ;;  %s1552_s14 = sld [smem:[#allocation6 + $0x38]]  ;;  %v200_v15 = vmul.f32 %v199_v2, %v1476_v59  ;;  %v193_v21 = vadd.f32 %v192_v6, %v176_v5  ;;  %v46_v6 = vlaneseq }
  0x51   :  { %s1555_s15 = sld [smem:[#allocation6 + $0x48]]  ;;  %v248_v63 = vadd.f32 %v247_v57, %v232_v50  ;;  %v255_v1 = vmul.f32 %v254_v60, %v1527_v40  ;;  %v210_v9 = vstv %s1531_s9 }
  0x52   :  { %v263_v3 = vstv %s1535_s10  ;;  %s1215_s16 = sld [smem:[#allocation6 + $0x60]]  ;;  %v211_v22 = vmul.f32 %v210_v9, %v1494_v11  ;;  %v201_v28 = vadd.f32 %v200_v15, %v184_v13 }
  0x53   :  { %s1565_s17 = sld [smem:[#allocation6 + $0x21]]  ;;  %v256_v49 = vadd.f32 %v255_v1, %v240_v39  ;;  %v264_v7 = vmul.f32 %v263_v3, %v1545_v54  ;;  %v218_v18 = vstv %s1538_s11 }
  0x54   :  { %v271_v12 = vstv %s1211_s12  ;;  %s1569_s18 = sld [smem:[#allocation6 + $0x39]]  ;;  %v219_v29 = vmul.f32 %v218_v18, %v1494_v11  ;;  %v212_v35 = vadd.f32 %v211_v22, %v193_v21  ;;  %v1660_v22 = vshrl.u32 %v46_v6, 7 }
  0x55   :  { %s1572_s19 = sld [smem:[#allocation6 + $0x49]]  ;;  %v265_v16 = vadd.f32 %v264_v7, %v248_v63  ;;  %v272_v17 = vmul.f32 %v271_v12, %v1545_v54  ;;  %v226_v26 = vstv %s1548_s13  ;;  %v1632_v63 = vmul.f32 %v1527_v40, %v1413_v14 }
  0x56   :  { %v280_v19 = vstv %s1552_s14  ;;  %s1219_s1 = sld [smem:[#allocation6 + $0x61]]  ;;  %v227_v36 = vmul.f32 %v226_v26, %v1510_v25  ;;  %v220_v43 = vadd.f32 %v219_v29, %v201_v28  ;;  %v433_v29 = vld [vmem:[#allocation2 + $0x48] sm:$0xff] }
  0x57   :  { %s1582_s20 = sld [smem:[#allocation6 + $0x23]]  ;;  %v273_v59 = vadd.f32 %v272_v17, %v256_v49  ;;  %v281_v24 = vmul.f32 %v280_v19, %v1562_v4  ;;  %v234_v31 = vstv %s1555_s15  ;;  %v1652_v17 = vmul.f32 %v1494_v11, %v1424_v23 }
  0x58   :  { %v288_v27 = vstv %s1215_s16  ;;  %s1586_s21 = sld [smem:[#allocation6 + $0x3a]]  ;;  %v235_v32 = vmul.f32 %v234_v31, %v1510_v25  ;;  %v228_v50 = vadd.f32 %v227_v36, %v212_v35  ;;  %vm434_vm0 = vcmp.gt.f32.partialorder %v433_v29, 0.5 }
  0x59   :  { %s1589_s0 = sld [smem:[#allocation6 + $0x4b]]  ;;  %v282_v8 = vadd.f32 %v281_v24, %v265_v16  ;;  %v289_v30 = vmul.f32 %v288_v27, %v1562_v4  ;;  %v242_v41 = vstv %s1565_s17 }
  0x5a   :  { %v297_v33 = vstv %s1569_s18  ;;  %s1223_s22 = sld [smem:[#allocation6 + $0x62]]  ;;  %v243_v51 = vmul.f32 %v242_v41, %v1527_v40  ;;  %v236_v39 = vadd.f32 %v235_v32, %v220_v43 }
  0x5b   :  { %s1599_s23 = sld [smem:[#allocation6 + $0x24]]  ;;  %v290_v37 = vadd.f32 %v289_v30, %v273_v59  ;;  %v298_v38 = vmul.f32 %v297_v33, %v1579_v20  ;;  %v250_v46 = vstv %s1572_s19  ;;  %v1676_v33 = vmul.f32 %v1510_v25, %v1424_v23 }
  0x5c   :  { %v305_v42 = vstv %s1219_s1  ;;  %s1603_s24 = sld [smem:[#allocation6 + $0x3b]]  ;;  %v251_v57 = vmul.f32 %v250_v46, %v1527_v40  ;;  %v244_v1 = vadd.f32 %v243_v51, %v228_v50  ;;  %v435_v50 = vstv %s1405_s29 }
  0x5d   :  { %s1606_s25 = sld [smem:[#allocation6 + $0x4c]]  ;;  %v299_v44 = vadd.f32 %v298_v38, %v282_v8  ;;  %v306_v45 = vmul.f32 %v305_v42, %v1579_v20  ;;  %v259_v55 = vstv %s1582_s20  ;;  %v1670_v8 = vand.u32 127, %v46_v6 }
  0x5e   :  { %v314_v47 = vstv %s1586_s21  ;;  %s1615_s26 = sld [smem:[#allocation6 + $0x63]]  ;;  %v260_v2 = vmul.f32 %v259_v55, %v1545_v54  ;;  %v252_v14 = vadd.f32 %v251_v57, %v236_v39  ;;  %v50_v38 = vmul.u32 128, %v1660_v22 }
  0x5f   :  { %s1618_s27 = sld [smem:[#allocation6 + $0x25]]  ;;  %v307_v52 = vadd.f32 %v306_v45, %v290_v37  ;;  %v315_v53 = vmul.f32 %v314_v47, %v1596_v34  ;;  %v267_v61 = vstv %s1589_s0  ;;  %v1697_v47 = vmul.f32 %v1527_v40, %v1424_v23 }
  0x60   :  { %v322_v56 = vstv %s1223_s22  ;;  %s1622_s28 = sld [smem:[#allocation6 + $0x3c]]  ;;  %v268_v9 = vmul.f32 %v267_v61, %v1545_v54  ;;  %v261_v18 = vadd.f32 %v260_v2, %v244_v1  ;;  %v51_v55 = vadd.s32 %v50_v38, %v1670_v8 }
  0x61   :  { %s1625_s30 = sld [smem:[#allocation6 + $0x4d]]  ;;  %v316_v58 = vadd.f32 %v315_v53, %v299_v44  ;;  %v323_v60 = vmul.f32 %v322_v56, %v1596_v34  ;;  %v276_v49 = vstv %s1599_s23 }
  0x62   :  { %v331_v62 = vstv %s1603_s24  ;;  %s1634_s4 = sld [smem:[#allocation6 + $0x64]]  ;;  %v277_v19 = vmul.f32 %v276_v49, %v1562_v4  ;;  %v269_v11 = vadd.f32 %v268_v9, %v252_v14  ;;  %v52_v6 = vcvt.s32.f32 %v51_v55 }
  0x63   :  { %s1637_s5 = sld [smem:[#allocation6 + $0x26]]  ;;  %v324_v3 = vadd.f32 %v323_v60, %v307_v52  ;;  %v332_v5 = vmul.f32 %v331_v62, %v1613_v48  ;;  %v284_v15 = vstv %s1606_s25  ;;  %v436_v62 = vsel %vm434_vm0, %v435_v50, %v433_v29 }
  0x64   :  { %v339_v7 = vstv %s1615_s26  ;;  %s1642_s6 = sld [smem:[#allocation6 + $0x3d]]  ;;  %v285_v26 = vmul.f32 %v284_v15, %v1562_v4  ;;  %v278_v4 = vadd.f32 %v277_v19, %v261_v18  ;;  %v53_v49 = vstv %s1411_s3 }
  0x65   :  { %s1645_s7 = sld [smem:[#allocation6 + $0x4e]]  ;;  %v333_v12 = vadd.f32 %v332_v5, %v316_v58  ;;  %v340_v13 = vmul.f32 %v339_v7, %v1613_v48  ;;  %v293_v59 = vstv %s1618_s27  ;;  %vm54_vm1 = vcmp.lt.f32.partialorder %v52_v6, %v53_v49 }
  0x66   :  { %v348_v16 = vstv %s1622_s28  ;;  %s1654_s8 = sld [smem:[#allocation6 + $0x65]]  ;;  %v294_v35 = vmul.f32 %v293_v59, %v1579_v20  ;;  %v286_v25 = vadd.f32 %v285_v26, %v269_v11  ;;  %vm437_vm2 = vcmp.lt.f32.partialorder %v436_v62, 0.5 }
  0x67   :  { %s1657_s9 = sld [smem:[#allocation6 + $0x27]]  ;;  %v341_v54 = vadd.f32 %v340_v13, %v324_v3  ;;  %v349_v21 = vmul.f32 %v348_v16, %v1632_v63  ;;  %v301_v30 = vstv %s1625_s30  ;;  %v1374_v11 = vmov 0.0  }
  0x68   :  { %v356_v24 = vstv %s1634_s4  ;;  %s1664_s10 = sld [smem:[#allocation6 + $0x3e]]  ;;  %v302_v43 = vmul.f32 %v301_v30, %v1579_v20  ;;  %v295_v20 = vadd.f32 %v294_v35, %v278_v4  ;;  %v1738_v26 = vsel %vm54_vm1, 1.0, %v1374_v11 }
  0x69   :  { %s1667_s11 = sld [smem:[#allocation6 + $0x4f]]  ;;  %v350_v27 = vadd.f32 %v349_v21, %v333_v12  ;;  %v357_v28 = vmul.f32 %v356_v24, %v1632_v63  ;;  %v310_v41 = vstv %s1637_s5 }
  0x6a   :  { %v365_v31 = vstv %s1642_s6  ;;  %s1678_s12 = sld [smem:[#allocation6 + $0x66]]  ;;  %v311_v51 = vmul.f32 %v310_v41, %v1596_v34  ;;  %v303_v40 = vadd.f32 %v302_v43, %v286_v25  ;;  %v1751_v41 = vld [vmem:[#allocation2 + $0x38] sm:$0xff] }
  0x6b   :  { %s1681_s13 = sld [smem:[#allocation6 + $0x28]]  ;;  %v358_v36 = vadd.f32 %v357_v28, %v341_v54  ;;  %v366_v37 = vmul.f32 %v365_v31, %v1652_v17  ;;  %v318_v45 = vstv %s1645_s7  ;;  %v1744_v31 = vld [vmem:[#allocation2 + $0x30] sm:$0xff] }
  0x6c   :  { %v373_v42 = vstv %s1654_s8  ;;  %s1687_s14 = sld [smem:[#allocation6 + $0x3f]]  ;;  %v319_v39 = vmul.f32 %v318_v45, %v1596_v34  ;;  %v312_v1 = vadd.f32 %v311_v51, %v295_v20 }
  0x6d   :  { %s1690_s15 = sld [smem:[#allocation6 + $0x50]]  ;;  %v367_v32 = vadd.f32 %v366_v37, %v350_v27  ;;  %v374_v44 = vmul.f32 %v373_v42, %v1652_v17  ;;  %v327_v56 = vstv %s1657_s9  ;;  %v445_v42 = vmul.f32 %v1738_v26, %v1744_v31 }
  0x6e   :  { %v382_v46 = vstv %s1664_s10  ;;  %s1699_s16 = sld [smem:[#allocation6 + $0x67]]  ;;  %v328_v2 = vmul.f32 %v327_v56, %v1613_v48  ;;  %v320_v14 = vadd.f32 %v319_v39, %v303_v40 }
  0x6f   :  { %s1702_s17 = sld [smem:[#allocation6 + $0x1]]  ;;  %v375_v52 = vadd.f32 %v374_v44, %v358_v36  ;;  %v383_v53 = vmul.f32 %v382_v46, %v1676_v33  ;;  %v335_v60 = vstv %s1667_s11  ;;  %v455_v20 = vrot.slane %v445_v42, 4 }
  0x70   :  { %s1708_s18 = sld [smem:[#allocation6 + $0x29]]  ;;  %v390_v23 = vstv %s1678_s12  ;;  %v336_v9 = vmul.f32 %v335_v60, %v1613_v48  ;;  %v329_v16 = vadd.f32 %v328_v2, %v312_v1 }
  0x71   :  { %v384_v57 = vadd.f32 %v383_v53, %v367_v32  ;;  %v391_v58 = vmul.f32 %v390_v23, %v1676_v33  ;;  %s1714_s29 = sld [smem:[#allocation6 + $0x51]]  ;;  %v344_v34 = vstv %s1681_s13 }
  0x72   :  { %v399_v61 = vstv %s1687_s14  ;;  %s1722_s19 = sld [smem:[#allocation6 + $0x2a]]  ;;  %v345_v18 = vmul.f32 %v344_v34, %v1632_v63  ;;  %v337_v21 = vadd.f32 %v336_v9, %v320_v14 }
  0x73   :  { %v392_v3 = vadd.f32 %v391_v58, %v375_v52  ;;  %v400_v5 = vmul.f32 %v399_v61, %v1697_v47  ;;  %v352_v15 = vstv %s1690_s15  ;;  %s1728_s1 = sld [smem:[#allocation6 + $0x52]]  ;;  %v456_v58 = vadd.f32 %v455_v20, %v445_v42  ;;  %s1376_s15 = smov [#allocation7]  }
  0x74   :  { %v407_v7 = vstv %s1699_s16  ;;  %s1732_s3 = sld [smem:[#allocation6 + $0x2b]]  ;;  %v353_v59 = vmul.f32 %v352_v15, %v1632_v63  ;;  %v346_v27 = vadd.f32 %v345_v18, %v329_v16  ;;  %s1141_s16 = sshll.u32 %s1376_s15, 4  ;;  %s1142_s16 = int_to_ptr.vmem [resolvable:$true] %s1141_s16 }
  0x75   :  { %v401_v12 = vadd.f32 %v400_v5, %v384_v57  ;;  %v408_v13 = vmul.f32 %v407_v7, %v1697_v47  ;;  %v438_v48 = vstv %s1702_s17  ;;  %s1242_s20 = sld [smem:[#allocation6 + $0x53]]  ;;  %v457_v49 = vrot.slane %v456_v58, 2  ;;  %s1344_s17 = scalar_lea.vmem %s1142_s16, 16 }
  0x76   :  { %v361_v54 = vstv %s1708_s18  ;;  %v1741_v29 = vsel %vm437_vm2, %v438_v48, %v436_v62  ;;  %v354_v4 = vadd.f32 %v353_v59, %v337_v21  ;;  %s1757_s21 = sld [smem:[#allocation6 + $0xf]]  ;;  %p1345_p10 = scmp.ne.s32.totalorder %s1142_s16, %s1344_s17 }
  0x77   :  { %v409_v19 = vadd.f32 %v408_v13, %v392_v3  ;;  %1284 = vrcp.f32 %v401_v12  ;;  %v369_v24 = vstv %s1714_s29  ;;  %v362_v28 = vmul.f32 %v361_v54, %v1652_v17  ;;  %s1245_s0 = sld [smem:[#allocation6 + $0xe]]  ;;  %s1348_s18 = scalar_lea.vmem %s1142_s16, 32 }
  0x78   :  { %v378_v30 = vstv %s1722_s19  ;;  %v370_v35 = vmul.f32 %v369_v24, %v1652_v17  ;;  %v444_v36 = vmul.f32 %v1738_v26, %v1741_v29  ;;  %v446_v17 = vmul.f32 %v1738_v26, %v1751_v41  ;;  %s1246_s22 = sld [smem:[#allocation6 + $0x11]]  ;;  %p1349_p11 = scmp.lt.s32.totalorder %s1142_s16, %s1142_s16 }
  0x79   :  { %1286 = vrcp.f32 %v409_v19  ;;  %v386_v63 = vstv %s1728_s1  ;;  %v363_v37 = vadd.f32 %v362_v28, %v346_v27  ;;  %v379_v38 = vmul.f32 %v378_v30, %v1676_v33  ;;  %s1247_s23 = sld [smem:[#allocation6 + $0x10]]  ;;  %p1350_p12 = scmp.lt.s32.totalorder %s1348_s18, %s1344_s17 }
  0x7a   :  { %v395_v25 = vstv %s1732_s3  ;;  %v371_v43 = vadd.f32 %v370_v35, %v354_v4  ;;  %v387_v32 = vmul.f32 %v386_v63, %v1676_v33  ;;  %v449_v45 = vrot.slane %v444_v36, 4  ;;  %s1777_s24 = sld [smem:[#allocation6 + $0x3]] }
  0x7b   :  { %v403_v44 = vstv %s1242_s20  ;;  %v380_v46 = vadd.f32 %v379_v38, %v363_v37  ;;  %v396_v50 = vmul.f32 %v395_v25, %v1697_v47  ;;  %v461_v23 = vrot.slane %v446_v17, 4  ;;  %s1155_s25 = sld [smem:[#allocation6 + $0x5]]  ;;  %p1351_p13 = por %p1350_p12, %p1349_p11 }
  0x7c   :  { %v388_v52 = vadd.f32 %v387_v32, %v371_v43  ;;  %v404_v53 = vmul.f32 %v403_v44, %v1697_v47  ;;  %v450_v56 = vadd.f32 %v449_v45, %v444_v36  ;;  %v420_v1 = vstv %s1757_s21  ;;  %s1152_s26 = sld [smem:[#allocation6 + $0x2]] }
  0x7d   :  { %v397_v40 = vadd.f32 %v396_v50, %v380_v46  ;;  %v462_v2 = vadd.f32 %v461_v23, %v446_v17  ;;  %v423_v34 = vstv %s1245_s0  ;;  %v458_v18 = vadd.f32 %v457_v49, %v456_v58  ;;  %s1154_s30 = sld [smem:[#allocation6 + $0x4]]  ;;  %p1352_p0 = pnand %p1351_p13, %p1345_p10 }
  0x7e   :  { %v405_v60 = vadd.f32 %v404_v53, %v388_v52  ;;  %v451_v6 = vrot.slane %v450_v56, 2  ;;  %v427_v47 = vstv %s1246_s22 }
  0x7f   :  { %v430_v9 = vstv %s1247_s23  ;;  %v459_v24 = vrot.slane %v458_v18, 1 }
  0x80   :  { %v452_v16 = vadd.f32 %v451_v6, %v450_v56  ;;  %v491_v53 = vstv %s1777_s24 }
  0x81   :  { %v460_v63 = vadd.f32 %v459_v24, %v458_v18 }
  0x82   :  { %v453_v59 = vrot.slane %v452_v16, 1 }
  0x84   :  { %v1285_v51 = vpop.eup %1284  ;;  %v454_v35 = vadd.f32 %v453_v59, %v452_v16  ;;  %v503_v16 = vstv %s1155_s25 }
  0x85   :  { %v411_v55 = vmul.f32 %v1285_v51, %v401_v12  ;;  %v463_v12 = vrot.slane %v462_v2, 2 }
  0x86   :  { %v1287_v33 = vpop.eup %1286  ;;  %v480_v44 = vsel %vm479_vm3, %v454_v35, %v460_v63 }
  0x87   :  { %v412_v39 = vsub.f32 2.0, %v411_v55  ;;  %v415_v57 = vmul.f32 %v1287_v33, %v409_v19  ;;  %v464_v48 = vadd.f32 %v463_v12, %v462_v2  ;;  %v495_v55 = vsub.s32 0, %v1660_v22  ;;  %v521_v22 = vld [vmem:[#allocation2] sm:$0xff] }
  0x89   :  { %v413_v61 = vmul.f32 %v1285_v51, %v412_v39  ;;  %v416_v62 = vsub.f32 2.0, %v415_v57  ;;  %v465_v4 = vrot.slane %v464_v48, 1 }
  0x8b   :  { %v417_v3 = vmul.f32 %v1287_v33, %v416_v62  ;;  %v418_v5 = vmul.f32 %v413_v61, %v397_v40  ;;  %v466_v25 = vadd.f32 %v465_v4, %v464_v48 }
  0x8d   :  { %v421_v7 = vmul.f32 %v420_v1, %v418_v5  ;;  %v425_v14 = vmul.f32 %v417_v3, %v405_v60  ;;  %v482_v46 = vsel %vm481_vm4, %v480_v44, %v466_v25  ;;  %v523_v3 = vld [vmem:[#allocation2 + $0x18] sm:$0xff]  ;;  %v527_v5 = vld [vmem:[#allocation2 + $0x20] sm:$0xff] }
  0x8e   :  { %v524_v6 = vsub.f32 %v521_v22, %v523_v3  ;;  %v528_v49 = vsub.f32 %v1398_v0, %v527_v5 }
  0x8f   :  { %v1764_v13 = vadd.f32 %v423_v34, %v421_v7  ;;  %v428_v15 = vmul.f32 %v427_v47, %v425_v14 }
  0x90   :  { %v525_v47 = vmul.f32 %v524_v6, %v524_v6  ;;  %v529_v7 = vmul.f32 %v528_v49, %v528_v49 }
  0x91   :  { %v1766_v19 = vadd.f32 %v430_v9, %v428_v15  ;;  %v448_v54 = vmul.f32 %v1738_v26, %v1764_v13  ;;  %v502_v57 = vsub.f32 %v1764_v13, %v1751_v41 }
  0x92   :  { %v530_v9 = vadd.f32 %v529_v7, %v525_v47 }
  0x93   :  { %v447_v21 = vmul.f32 %v1738_v26, %v1766_v19  ;;  %v473_v27 = vrot.slane %v448_v54, 4  ;;  %v501_v39 = vsub.f32 %v1766_v19, %v1744_v31  ;;  %v512_v1 = vmul.f32 %v502_v57, %v502_v57 }
  0x94   :  { %v508_v0 = vmul.f32 %v503_v16, %v502_v57  ;;  %vm533_vm10 = vcmp.eq.f32.partialorder %v530_v9, inf  ;;  %v536_v35 = vand.u32 2147483648, %v530_v9  ;;  %vm535_vm11 = vcmp.eq.f32.partialorder %v530_v9, 0.0 }
  0x95   :  { %v467_v28 = vrot.slane %v447_v21, 4  ;;  %v474_v30 = vadd.f32 %v473_v27, %v448_v54  ;;  %v511_v62 = vmul.f32 %v501_v39, %v501_v39  ;;  %v504_v48 = vmul.f32 %v503_v16, %v501_v39  ;;  %v567_v27 = vld [vmem:[#allocation2 + $0x28] sm:$0xff] }
  0x96   :  { %v568_v4 = vsub.f32 %v1409_v10, %v567_v27 }
  0x97   :  { %v468_v36 = vadd.f32 %v467_v28, %v447_v21  ;;  %v475_v37 = vrot.slane %v474_v30, 2  ;;  %v513_v2 = vadd.f32 %v512_v1, %v511_v62 }
  0x99   :  { %v469_v38 = vrot.slane %v468_v36, 2  ;;  %v476_v42 = vadd.f32 %v475_v37, %v474_v30  ;;  %1288 = vrsqrt.f32 %v513_v2  ;;  %vm516_vm8 = vcmp.eq.f32.partialorder %v513_v2, inf }
  0x9a   :  { %v519_v12 = vand.u32 2147483648, %v513_v2  ;;  %vm518_vm9 = vcmp.eq.f32.partialorder %v513_v2, 0.0  ;;  %1290 = vrsqrt.f32 %v530_v9 }
  0x9b   :  { %v470_v43 = vadd.f32 %v469_v38, %v468_v36  ;;  %v477_v32 = vrot.slane %v476_v42, 1  ;;  %v506_v38 = vstv %s1152_s26 }
  0x9d   :  { %v471_v17 = vrot.slane %v470_v43, 1  ;;  %v478_v45 = vadd.f32 %v477_v32, %v476_v42  ;;  %v569_v42 = vand.u32 2147483647, %v568_v4 }
  0x9f   :  { %v472_v50 = vadd.f32 %v471_v17, %v470_v43 }
  0xa1   :  { %v484_v20 = vsel %vm483_vm5, %v482_v46, %v472_v50 }
  0xa2   :  { %v486_v51 = vsel %vm485_vm6, %v484_v20, %v478_v45 }
  0xa3   :  { %v488_v52 = vsel %vm487_vm7, %v486_v51, 0.0 }
  0xa4   :  { %489 = vadd.xlane.f32.xlu0 %v488_v52 }
  0xa6   :  { %v1289_v34 = vpop.eup %1288 }
  0xa7   :  { %v515_v14 = vmul.f32 %v1289_v34, %v513_v2  ;;  %v1291_v59 = vpop.eup %1290 }
  0xa8   :  { %v532_v28 = vmul.f32 %v1291_v59, %v530_v9 }
  0xa9   :  { %v517_v15 = vsel %vm516_vm8, %v513_v2, %v515_v14 }
  0xaa   :  { %v520_v18 = vsel %vm518_vm9, %v519_v12, %v517_v15  ;;  %v534_v63 = vsel %vm533_vm10, %v530_v9, %v532_v28 }
  0xab   :  { %v571_v54 = vmul.f32 %v520_v18, %v503_v16  ;;  %v537_v32 = vsel %vm535_vm11, %v536_v35, %v534_v63 }
  0xad   :  { %1292 = vtanh.f32 %v571_v54 }
  0xae   :  { %1294 = vtanh.f32 %v504_v48 }
  0xaf   :  { %1296 = vtanh.f32 %v508_v0 }
  0xba   :  { %v1293_v36 = vpop.eup %1292 }
  0xbb   :  { %v573_v17 = vmul.f32 %v1293_v36, %v506_v38  ;;  %v1295_v45 = vpop.eup %1294 }
 0x12d   :  { %v490_v33 = vpop.xlane.xlu0 %489 }
 0x12e   :  { %v492_v56 = vmul.f32 %v491_v53, %v490_v33 }
 0x130   :  { %v496_v23 = vrot.slane %v492_v56, %v495_v55  ;;  %v539_v40 = vrot.slane %v492_v56, 6  ;;  %v507_v55 = vmul.f32 %v1295_v45, %v506_v38 }
 0x132   :  { %v541_v58 = vsub.f32 %v492_v56, %v539_v40  ;;  %v497_v21 = vsub.f32 %v1741_v29, %v496_v23  ;;  %v1297_v56 = vpop.eup %1296 }
 0x133   :  { %v510_v57 = vmul.f32 %v1297_v56, %v506_v38 }
 0x134   :  { %v543_v60 = vrot.slane %v541_v58, 3  ;;  %v549_v61 = vrot.slane %v541_v58, 4  ;;  %v498_v24 = vadd.f32 1.0, %v497_v21 }
 0x136   :  { %1249 = vpush %v543_v60  ;;  %v499_v30 = vmax.f32 %v498_v24, 0.0 }
 0x137   :  { %1251 = vpush %v549_v61 }
 0x138   :  { %v1791_v37 = vmul.f32 %v1738_v26, %v499_v30 }
 0x13a   :  { %v565_v50 = vmul.f32 %v537_v32, %v1791_v37  ;;  %v570_v20 = vmul.f32 %v569_v42, %v1791_v37  ;;  %v574_v33 = vmul.f32 %v573_v17, %v1791_v37  ;;  %v575_v58 = vmul.f32 %v507_v55, %v1791_v37 }
 0x13b   :  { %v576_v1 = vmul.f32 %v510_v57, %v1791_v37  ;;  %vm661_vm2 = vcmp.gt.f32.partialorder %v1791_v37, 0.5 }
 0x13c   :  { %v580_v40 = vrot.slane %v565_v50, 4  ;;  %v586_v39 = vrot.slane %v570_v20, 4  ;;  %v592_v60 = vrot.slane %v574_v33, 4  ;;  %v598_v22 = vrot.slane %v575_v58, 4 }
 0x13d   :  { %v604_v34 = vrot.slane %v576_v1, 4 }
 0x13e   :  { %v581_v61 = vadd.f32 %v580_v40, %v565_v50  ;;  %v587_v62 = vadd.f32 %v586_v39, %v570_v20  ;;  %v593_v2 = vadd.f32 %v592_v60, %v574_v33  ;;  %v599_v49 = vadd.f32 %v598_v22, %v575_v58 }
 0x13f   :  { %v605_v15 = vadd.f32 %v604_v34, %v576_v1  ;;  %v652_v22 = vstv %s1154_s30 }
 0x140   :  { %v582_v3 = vrot.slane %v581_v61, 2  ;;  %v588_v5 = vrot.slane %v587_v62, 2  ;;  %v594_v6 = vrot.slane %v593_v2, 2  ;;  %v600_v12 = vrot.slane %v599_v49, 2 }
 0x141   :  { %v606_v27 = vrot.slane %v605_v15, 2 }
 0x142   :  { %v583_v47 = vadd.f32 %v582_v3, %v581_v61  ;;  %v589_v7 = vadd.f32 %v588_v5, %v587_v62  ;;  %v595_v9 = vadd.f32 %v594_v6, %v593_v2  ;;  %v601_v24 = vadd.f32 %v600_v12, %v599_v49 }
 0x143   :  { %v607_v38 = vadd.f32 %v606_v27, %v605_v15 }
 0x144   :  { %v584_v18 = vrot.slane %v583_v47, 1  ;;  %v590_v54 = vrot.slane %v589_v7, 1  ;;  %v596_v0 = vrot.slane %v595_v9, 1  ;;  %v602_v42 = vrot.slane %v601_v24, 1 }
 0x145   :  { %v608_v17 = vrot.slane %v607_v38, 1 }
 0x146   :  { %v585_v4 = vadd.f32 %v584_v18, %v583_v47  ;;  %v591_v35 = vadd.f32 %v590_v54, %v589_v7 }
 0x147   :  { %v609_v55 = vadd.f32 %v608_v17, %v607_v38 }
 0x148   :  { %v622_v32 = vsel %vm479_vm3, %v585_v4, %v591_v35 }
 0x167   :  { %s1250_s27 = spop %1249 }
 0x168   :  { %v545_v29 = vstv %s1250_s27  ;;  %s1252_s28 = spop %1251 }
 0x169   :  { %v547_v25 = vadd.f32 %v545_v29, %v1744_v31  ;;  %v551_v43 = vstv %s1252_s28  ;;  %v597_v29 = vadd.f32 %v596_v0, %v595_v9 }
 0x16a   :  { %v553_v44 = vadd.f32 %v551_v43, %v1751_v41 }
 0x16b   :  { %v548_v10 = vsub.f32 %v547_v25, %v1766_v19  ;;  %v623_v45 = vsel %vm481_vm4, %v622_v32, %v597_v29 }
 0x16c   :  { %v554_v46 = vsub.f32 %v553_v44, %v1764_v13 }
 0x16d   :  { %v555_v51 = vmul.f32 %v548_v10, %v548_v10 }
 0x16e   :  { %v556_v52 = vmul.f32 %v554_v46, %v554_v46  ;;  %v603_v46 = vadd.f32 %v602_v42, %v601_v24 }
 0x170   :  { %v557_v23 = vadd.f32 %v556_v52, %v555_v51 }
 0x172   :  { %1298 = vrsqrt.f32 %v557_v23  ;;  %vm560_vm12 = vcmp.eq.f32.partialorder %v557_v23, inf  ;;  %v563_v48 = vand.u32 2147483648, %v557_v23  ;;  %vm562_vm13 = vcmp.eq.f32.partialorder %v557_v23, 0.0 }
 0x17f   :  { %v1299_v14 = vpop.eup %1298 }
 0x180   :  { %v559_v16 = vmul.f32 %v1299_v14, %v557_v23 }
 0x182   :  { %v561_v21 = vsel %vm560_vm12, %v557_v23, %v559_v16  ;;  %vm1104_vm12 = vcmp.eq.s32.totalorder %v1670_v8, 2 }
 0x183   :  { %v564_v59 = vsel %vm562_vm13, %v563_v48, %v561_v21  ;;  %vm1094_vm13 = vcmp.eq.s32.totalorder %v1670_v8, 0 }
 0x184   :  { %v577_v28 = vmul.f32 %v1738_v26, %v564_v59  ;;  %v578_v30 = vmul.f32 %v564_v59, %v564_v59 }
 0x186   :  { %v579_v63 = vmul.f32 %v1738_v26, %v578_v30  ;;  %v610_v36 = vrot.slane %v577_v28, 4  ;;  %v624_v26 = vsel %vm483_vm5, %v623_v45, %v603_v46 }
 0x187   :  { %v625_v23 = vsel %vm485_vm6, %v624_v26, %v609_v55 }
 0x188   :  { %v611_v25 = vadd.f32 %v610_v36, %v577_v28  ;;  %v616_v43 = vrot.slane %v579_v63, 4 }
 0x18a   :  { %v612_v44 = vrot.slane %v611_v25, 2  ;;  %v617_v10 = vadd.f32 %v616_v43, %v579_v63 }
 0x18c   :  { %v613_v50 = vadd.f32 %v612_v44, %v611_v25  ;;  %v618_v20 = vrot.slane %v617_v10, 2 }
 0x18e   :  { %v614_v51 = vrot.slane %v613_v50, 1  ;;  %v619_v52 = vadd.f32 %v618_v20, %v617_v10 }
 0x190   :  { %v615_v33 = vadd.f32 %v614_v51, %v613_v50  ;;  %v620_v56 = vrot.slane %v619_v52, 1 }
 0x192   :  { %v621_v40 = vadd.f32 %v620_v56, %v619_v52  ;;  %v626_v39 = vsel %vm487_vm7, %v625_v23, %v615_v33 }
 0x194   :  { %v628_v57 = vsel %vm627_vm14, %v626_v39, %v621_v40 }
 0x195   :  { %v630_v58 = vsel %vm629_vm15, %v628_v57, 0.0 }
 0x196   :  { %631 = vadd.xlane.f32.xlu0 %v630_v58 }
 0x21f   :  { %v632_v60 = vpop.xlane.xlu0 %631 }
 0x220   :  { %v1813_v61 = vmul.f32 %v632_v60, %v491_v53 }
 0x222   :  { %v646_v62 = vmul.f32 %v1813_v61, %v632_v60 }
 0x224   :  { %v648_v1 = vrot.slane %v646_v62, 7 }
 0x226   :  { %v650_v2 = vsub.f32 %v632_v60, %v648_v1 }
 0x228   :  { %v651_v3 = vmax.f32 %v650_v2, 0.0 }
 0x22a   :  { %v653_v5 = vmul.f32 %v652_v22, %v651_v3 }
 0x22c   :  { %1300 = vrsqrt.f32 %v653_v5  ;;  %vm656_vm0 = vcmp.eq.f32.partialorder %v653_v5, inf  ;;  %v659_v34 = vand.u32 2147483648, %v653_v5  ;;  %vm658_vm1 = vcmp.eq.f32.partialorder %v653_v5, 0.0 }
 0x239   :  { %v1301_v6 = vpop.eup %1300 }
 0x23a   :  { %v655_v49 = vmul.f32 %v1301_v6, %v653_v5 }
 0x23c   :  { %v657_v47 = vsel %vm656_vm0, %v653_v5, %v655_v49  ;;  %vm1116_vm0 = vcmp.eq.s32.totalorder %v1670_v8, 4 }
 0x23d   :  { %v660_v7 = vsel %vm658_vm1, %v659_v34, %v657_v47  ;;  %vm1126_vm1 = vcmp.eq.s32.totalorder %v1670_v8, 5 }
 0x23e   :  { %v663_v14 = vrot.slane %v660_v7, 1 }
 0x240   :  { %v665_v9 = vadd.f32 %v663_v14, %v1813_v61 }
 0x242   :  { %v667_v53 = vrot.slane %v665_v9, 5 }
 0x244   :  { %1253 = vpush %v667_v53 }
 0x275   :  { %s1254_s4 = spop %1253 }
 0x276   :  { %v669_v12 = vstv %s1254_s4 }
 0x277   :  { %vm671_vm8 = vcmp.lt.f32.partialorder %v564_v59, %v669_v12 }
 0x278   :  { %vm672_vm9 = vmand %vm661_vm2, %vm671_vm8 }
 0x279   :  { %v1819_v15 = vsel %vm672_vm9, 1.0, %v1374_v11 }
 0x27a   :  { %v675_v16 = vmul.f32 %v1819_v15, %v1744_v31  ;;  %v676_v18 = vmul.f32 %v1819_v15, %v1751_v41  ;;  %v677_v54 = vmul.f32 %v1819_v15, %v1766_v19  ;;  %v678_v48 = vmul.f32 %v1819_v15, %v1764_v13 }
 0x27b   :  { %v679_v21 = vrot.slane %v1819_v15, 4 }
 0x27c   :  { %v685_v37 = vrot.slane %v675_v16, 4  ;;  %v691_v59 = vrot.slane %v676_v18, 4  ;;  %v697_v0 = vrot.slane %v677_v54, 4  ;;  %v703_v24 = vrot.slane %v678_v48, 4 }
 0x27d   :  { %v680_v11 = vadd.f32 %v1819_v15, %v679_v21 }
 0x27e   :  { %v686_v27 = vadd.f32 %v685_v37, %v675_v16  ;;  %v692_v28 = vadd.f32 %v691_v59, %v676_v18  ;;  %v698_v30 = vadd.f32 %v697_v0, %v677_v54  ;;  %v704_v4 = vadd.f32 %v703_v24, %v678_v48 }
 0x27f   :  { %v681_v35 = vrot.slane %v680_v11, 2 }
 0x280   :  { %v687_v63 = vrot.slane %v686_v27, 2  ;;  %v693_v36 = vrot.slane %v692_v28, 2  ;;  %v699_v29 = vrot.slane %v698_v30, 2  ;;  %v705_v38 = vrot.slane %v704_v4, 2 }
 0x281   :  { %v682_v42 = vadd.f32 %v681_v35, %v680_v11 }
 0x282   :  { %v688_v25 = vadd.f32 %v687_v63, %v686_v27  ;;  %v694_v43 = vadd.f32 %v693_v36, %v692_v28  ;;  %v700_v32 = vadd.f32 %v699_v29, %v698_v30  ;;  %v706_v44 = vadd.f32 %v705_v38, %v704_v4 }
 0x283   :  { %v683_v10 = vrot.slane %v682_v42, 1 }
 0x284   :  { %v689_v17 = vrot.slane %v688_v25, 1  ;;  %v695_v45 = vrot.slane %v694_v43, 1  ;;  %v701_v46 = vrot.slane %v700_v32, 1  ;;  %v707_v50 = vrot.slane %v706_v44, 1 }
 0x285   :  { %v684_v20 = vadd.f32 %v683_v10, %v682_v42 }
 0x286   :  { %v690_v51 = vadd.f32 %v689_v17, %v688_v25  ;;  %v696_v52 = vadd.f32 %v695_v45, %v694_v43  ;;  %v702_v26 = vadd.f32 %v701_v46, %v700_v32  ;;  %v708_v33 = vadd.f32 %v707_v50, %v706_v44 }
 0x288   :  { %v709_v55 = vsel %vm479_vm3, %v684_v20, %v690_v51 }
 0x289   :  { %v710_v56 = vsel %vm481_vm4, %v709_v55, %v696_v52 }
 0x28a   :  { %v711_v23 = vsel %vm483_vm5, %v710_v56, %v702_v26 }
 0x28b   :  { %v712_v40 = vsel %vm485_vm6, %v711_v23, %v708_v33 }
 0x28c   :  { %v713_v39 = vsel %vm487_vm7, %v712_v40, 0.0 }
 0x28d   :  { %714 = vadd.xlane.f32.xlu1 %v713_v39 }
 0x316   :  { %v1836_v57 = vpop.xlane.xlu1 %714 }
 0x317   :  { %v716_v58 = vmax.f32 %v1836_v57, 1.0  ;;  %vm1076_vm10 = vcmp.ge.f32.partialorder %v1836_v57, 3.0 }
 0x319   :  { %1302 = vrcp.f32 %v716_v58 }
 0x326   :  { %v1839_v60 = vpop.eup %1302 }
 0x327   :  { %v720_v62 = vrot.slane %v1839_v60, 7  ;;  %v723_v1 = vrot.slane %v1839_v60, 6  ;;  %v726_v2 = vrot.slane %v1839_v60, 5  ;;  %v729_v22 = vrot.slane %v1839_v60, 4 }
 0x329   :  { %v722_v3 = vmul.f32 %v720_v62, %v1836_v57  ;;  %v725_v5 = vmul.f32 %v723_v1, %v1836_v57  ;;  %v728_v6 = vmul.f32 %v726_v2, %v1836_v57  ;;  %v731_v49 = vmul.f32 %v729_v22, %v1836_v57 }
 0x32b   :  { %v733_v34 = vrot.slane %v722_v3, 1  ;;  %v739_v47 = vrot.slane %v725_v5, 2  ;;  %v745_v7 = vrot.slane %v728_v6, 3  ;;  %v751_v14 = vrot.slane %v731_v49, 4 }
 0x32d   :  { %1255 = vpush %v733_v34 }
 0x32e   :  { %1257 = vpush %v739_v47 }
 0x32f   :  { %1259 = vpush %v745_v7 }
 0x330   :  { %1261 = vpush %v751_v14 }
 0x35e   :  { %s1256_s5 = spop %1255 }
 0x35f   :  { %v735_v9 = vstv %s1256_s5  ;;  %s1258_s6 = spop %1257 }
 0x360   :  { %v1850_v53 = vsub.f32 %v1744_v31, %v735_v9  ;;  %v741_v12 = vstv %s1258_s6  ;;  %s1852_s7 = spop %1259 }
 0x361   :  { %v1855_v16 = vsub.f32 %v1751_v41, %v741_v12  ;;  %v747_v18 = vstv %s1852_s7  ;;  %s1858_s8 = spop %1261 }
 0x362   :  { %v756_v54 = vmul.f32 %v1850_v53, %v1850_v53  ;;  %v749_v31 = vsub.f32 %v1766_v19, %v747_v18  ;;  %v753_v48 = vstv %s1858_s8  ;;  %v760_v21 = vmul.f32 %v1819_v15, %v1850_v53 }
 0x363   :  { %v758_v37 = vmul.f32 %v1855_v16, %v1850_v53  ;;  %v755_v41 = vsub.f32 %v1764_v13, %v753_v48  ;;  %v761_v59 = vmul.f32 %v1855_v16, %v1855_v16  ;;  %v763_v0 = vmul.f32 %v1819_v15, %v1855_v16 }
 0x364   :  { %v764_v24 = vmul.f32 %v749_v31, %v1850_v53  ;;  %v768_v19 = vmul.f32 %v749_v31, %v1855_v16  ;;  %v829_v11 = vmul.f32 %v1819_v15, %v749_v31  ;;  %v757_v27 = vmul.f32 %v1819_v15, %v756_v54 }
 0x365   :  { %v766_v28 = vmul.f32 %v755_v41, %v1850_v53  ;;  %v827_v30 = vmul.f32 %v755_v41, %v1855_v16  ;;  %v830_v13 = vmul.f32 %v1819_v15, %v755_v41  ;;  %v759_v4 = vmul.f32 %v1819_v15, %v758_v37 }
 0x366   :  { %v765_v35 = vmul.f32 %v1819_v15, %v764_v24  ;;  %v769_v63 = vmul.f32 %v1819_v15, %v768_v19  ;;  %v837_v36 = vrot.slane %v829_v11, 4  ;;  %v762_v29 = vmul.f32 %v1819_v15, %v761_v59 }
 0x367   :  { %v767_v38 = vmul.f32 %v1819_v15, %v766_v28  ;;  %v828_v42 = vmul.f32 %v1819_v15, %v827_v30  ;;  %v843_v25 = vrot.slane %v830_v13, 4  ;;  %v770_v43 = vrot.slane %v757_v27, 4 }
 0x368   :  { %v800_v32 = vrot.slane %v765_v35, 4  ;;  %v812_v44 = vrot.slane %v769_v63, 4  ;;  %v838_v10 = vadd.f32 %v837_v36, %v829_v11  ;;  %v776_v17 = vrot.slane %v759_v4, 4 }
 0x369   :  { %v806_v45 = vrot.slane %v767_v38, 4  ;;  %v831_v46 = vrot.slane %v828_v42, 4  ;;  %v844_v50 = vadd.f32 %v843_v25, %v830_v13  ;;  %v771_v20 = vadd.f32 %v770_v43, %v757_v27 }
 0x36a   :  { %v801_v51 = vadd.f32 %v800_v32, %v765_v35  ;;  %v839_v52 = vrot.slane %v838_v10, 2  ;;  %v777_v26 = vadd.f32 %v776_v17, %v759_v4  ;;  %v782_v55 = vrot.slane %v760_v21, 4 }
 0x36b   :  { %v807_v33 = vadd.f32 %v806_v45, %v767_v38  ;;  %v832_v56 = vadd.f32 %v831_v46, %v828_v42  ;;  %v845_v23 = vrot.slane %v844_v50, 2  ;;  %v772_v40 = vrot.slane %v771_v20, 2 }
 0x36c   :  { %v802_v39 = vrot.slane %v801_v51, 2  ;;  %v840_v58 = vadd.f32 %v839_v52, %v838_v10  ;;  %v778_v62 = vrot.slane %v777_v26, 2  ;;  %v783_v1 = vadd.f32 %v782_v55, %v760_v21 }
 0x36d   :  { %v833_v2 = vrot.slane %v832_v56, 2  ;;  %v846_v22 = vadd.f32 %v845_v23, %v844_v50  ;;  %v773_v3 = vadd.f32 %v772_v40, %v771_v20  ;;  %v788_v5 = vrot.slane %v762_v29, 4 }
 0x36e   :  { %v841_v6 = vrot.slane %v840_v58, 1  ;;  %v779_v49 = vadd.f32 %v778_v62, %v777_v26  ;;  %v784_v34 = vrot.slane %v783_v1, 2  ;;  %v794_v47 = vrot.slane %v763_v0, 4 }
 0x36f   :  { %v834_v7 = vadd.f32 %v833_v2, %v832_v56  ;;  %v847_v14 = vrot.slane %v846_v22, 1  ;;  %v774_v9 = vrot.slane %v773_v3, 1  ;;  %v789_v12 = vadd.f32 %v788_v5, %v762_v29 }
 0x370   :  { %v842_v54 = vadd.f32 %v841_v6, %v840_v58  ;;  %v780_v31 = vrot.slane %v779_v49, 1  ;;  %v785_v37 = vadd.f32 %v784_v34, %v783_v1  ;;  %v795_v41 = vadd.f32 %v794_v47, %v763_v0 }
 0x371   :  { %v835_v59 = vrot.slane %v834_v7, 1  ;;  %v848_v24 = vadd.f32 %v847_v14, %v846_v22  ;;  %v775_v19 = vadd.f32 %v774_v9, %v773_v3  ;;  %v790_v21 = vrot.slane %v789_v12, 2 }
 0x372   :  { %v781_v11 = vadd.f32 %v780_v31, %v779_v49  ;;  %v786_v27 = vrot.slane %v785_v37, 1  ;;  %v796_v28 = vrot.slane %v795_v41, 2  ;;  %v803_v30 = vadd.f32 %v802_v39, %v801_v51 }
 0x373   :  { %v836_v13 = vadd.f32 %v835_v59, %v834_v7  ;;  %v791_v4 = vadd.f32 %v790_v21, %v789_v12  ;;  %v808_v35 = vrot.slane %v807_v33, 2  ;;  %v813_v36 = vadd.f32 %v812_v44, %v769_v63 }
 0x374   :  { %v787_v38 = vadd.f32 %v786_v27, %v785_v37  ;;  %v797_v42 = vadd.f32 %v796_v28, %v795_v41  ;;  %v804_v25 = vrot.slane %v803_v30, 1  ;;  %v818_v29 = vsel %vm479_vm3, %v775_v19, %v781_v11 }
 0x375   :  { %v849_v43 = vsel %vm479_vm3, %v836_v13, %v842_v54  ;;  %v792_v0 = vrot.slane %v791_v4, 1  ;;  %v809_v32 = vadd.f32 %v808_v35, %v807_v33  ;;  %v814_v10 = vrot.slane %v813_v36, 2 }
 0x376   :  { %v850_v17 = vsel %vm481_vm4, %v849_v43, %v848_v24  ;;  %v798_v45 = vrot.slane %v797_v42, 1  ;;  %v819_v46 = vsel %vm481_vm4, %v818_v29, %v787_v38  ;;  %v805_v52 = vadd.f32 %v804_v25, %v803_v30 }
 0x377   :  { %v851_v50 = vsel %vm483_vm5, %v850_v17, 0.0  ;;  %v793_v20 = vadd.f32 %v792_v0, %v791_v4  ;;  %v810_v51 = vrot.slane %v809_v32, 1  ;;  %v815_v63 = vadd.f32 %v814_v10, %v813_v36 }
 0x378   :  { %852 = vadd.xlane.f32.xlu0 %v851_v50  ;;  %v799_v44 = vadd.f32 %v798_v45, %v797_v42  ;;  %v867_v62 = vrot.slane %v1836_v57, 7  ;;  %v855_v2 = vrot.slane %v1836_v57, 5 }
 0x379   :  { %v816_v26 = vrot.slane %v815_v63, 1  ;;  %v820_v55 = vsel %vm483_vm5, %v819_v46, %v793_v20  ;;  %v811_v56 = vadd.f32 %v810_v51, %v809_v32  ;;  %v1375_v32 = vmov 0  }
 0x37a   :  { %v821_v33 = vsel %vm485_vm6, %v820_v55, %v799_v44  ;;  %1283 = vset.pattern.permute.xlu1 %v1375_v32  ;;  %1282 = vset.pattern.permute.xlu0 %v1375_v32 }
 0x37b   :  { %v817_v23 = vadd.f32 %v816_v26, %v815_v63  ;;  %v822_v40 = vsel %vm487_vm7, %v821_v33, %v805_v52 }
 0x37c   :  { %v823_v39 = vsel %vm627_vm14, %v822_v40, %v811_v56  ;;  %vm1101_vm14 = vcmp.eq.s32.totalorder %v1670_v8, 1 }
 0x37d   :  { %v824_v58 = vsel %vm629_vm15, %v823_v39, %v817_v23  ;;  %vm1110_vm15 = vcmp.eq.s32.totalorder %v1670_v8, 3 }
 0x37e   :  { %825 = vadd.xlane.f32.xlu1 %v824_v58 }
 0x401   :  { %v853_v46 = vpop.xlane.xlu0 %852 }
 0x402   :  { %v964_v52 = vrot.slane %v853_v46, 1  ;;  %v957_v33 = vrot.slane %v853_v46, 4 }
 0x407   :  { %v1901_v1 = vpop.xlane.xlu1 %825 }
 0x408   :  { %v858_v22 = vmul.f32 %v1901_v1, %v1901_v1  ;;  %v864_v3 = vrot.slane %v1901_v1, 6  ;;  %v869_v5 = vmul.f32 %v867_v62, %v1901_v1  ;;  %v1909_v6 = vrot.slane %v1901_v1, 3 }
 0x409   :  { %v877_v49 = vrot.slane %v1901_v1, 7  ;;  %v857_v34 = vmul.f32 %v855_v2, %v1901_v1  ;;  %v891_v0 = vrot.slane %v1901_v1, 4  ;;  %v888_v17 = vrot.slane %v1901_v1, 1 }
 0x40a   :  { %v860_v47 = vrot.slane %v858_v22, 1  ;;  %v866_v7 = vmul.f32 %v864_v3, %v1901_v1  ;;  %v871_v14 = vrot.slane %v869_v5, 5  ;;  %v876_v9 = vmul.f32 %v1909_v6, %v1901_v1 }
 0x40b   :  { %v879_v12 = vmul.f32 %v877_v49, %v1901_v1  ;;  %v893_v10 = vmul.f32 %v891_v0, %v1901_v1  ;;  %v885_v45 = vrot.slane %v858_v22, 2  ;;  %v884_v20 = vmul.f32 %v1901_v1, %v1836_v57 }
 0x40c   :  { %v862_v54 = vsub.f32 %v857_v34, %v860_v47  ;;  %v873_v31 = vsub.f32 %v866_v7, %v871_v14  ;;  %v920_v41 = vmul.f32 %v876_v9, %v1836_v57  ;;  %v890_v51 = vmul.f32 %v888_v17, %v1901_v1 }
 0x40d   :  { %v881_v37 = vrot.slane %v879_v12, 2  ;;  %v895_v50 = vrot.slane %v893_v10, 7  ;;  %v887_v44 = vsub.f32 %v884_v20, %v885_v45  ;;  %v898_v56 = vsub.f32 %v876_v9, %v860_v47 }
 0x40e   :  { %v900_v59 = vrot.slane %v862_v54, 3  ;;  %v904_v24 = vrot.slane %v873_v31, 3  ;;  %v921_v27 = vand.u32 2147483647, %v920_v41  ;;  %v942_v62 = vrot.slane %v1901_v1, 2 }
 0x40f   :  { %v883_v19 = vsub.f32 %v876_v9, %v881_v37  ;;  %v897_v55 = vsub.f32 %v890_v51, %v895_v50  ;;  %v1004_v22 = vrot.slane %v853_v46, 7  ;;  %v1008_v5 = vrot.slane %v853_v46, 2 }
 0x410   :  { %v906_v21 = vmul.f32 %v904_v24, %v1901_v1  ;;  %v902_v28 = vmul.f32 %v900_v59, %v1901_v1  ;;  %v922_v36 = vmax.f32 %v921_v27, 1e-30  ;;  %v1001_v24 = vrot.slane %v1901_v1, 5 }
 0x411   :  { %v912_v11 = vrot.slane %v883_v19, 7 }
 0x412   :  { %v908_v30 = vrot.slane %v906_v21, 1  ;;  %v923_v25 = vmul.f32 1e-06, %v922_v36 }
 0x413   :  { %v914_v13 = vmul.f32 %v912_v11, %v1901_v1 }
 0x414   :  { %v910_v4 = vadd.f32 %v908_v30, %v902_v28 }
 0x415   :  { %v916_v35 = vrot.slane %v914_v13, 2 }
 0x417   :  { %v918_v38 = vadd.f32 %v916_v35, %v910_v4 }
 0x419   :  { %v919_v42 = vand.u32 2147483647, %v918_v38 }
 0x41b   :  { %vm1923_vm3 = vcmp.gt.f32.partialorder %v919_v42, %v923_v25 }
 0x41c   :  { %v925_v43 = vsel %vm1923_vm3, %v918_v38, 1.0  ;;  %vm1077_vm11 = vmand %vm1923_vm3, %vm1076_vm10 }
 0x41d   :  { %1304 = vrcp.f32 %v925_v43 }
 0x42a   :  { %v1305_v63 = vpop.eup %1304 }
 0x42b   :  { %v928_v26 = vsel %vm1923_vm3, %v1305_v63, 0.0 }
 0x42c   :  { %v930_v23 = vrot.slane %v928_v26, 5  ;;  %v933_v40 = vrot.slane %v928_v26, 4  ;;  %v936_v39 = vrot.slane %v928_v26, 7  ;;  %v939_v58 = vmul.f32 %v928_v26, %v887_v44 }
 0x42d   :  { %v941_v2 = vmul.f32 %v928_v26, %v898_v56 }
 0x42e   :  { %v932_v34 = vmul.f32 %v930_v23, %v862_v54  ;;  %v935_v7 = vmul.f32 %v933_v40, %v873_v31  ;;  %v938_v14 = vmul.f32 %v936_v39, %v883_v19  ;;  %v940_v12 = vmul.f32 %v936_v39, %v897_v55 }
 0x42f   :  { %v972_v37 = vmul.f32 %v939_v58, %v877_v49  ;;  %v996_v41 = vmul.f32 %v964_v52, %v941_v2  ;;  %v983_v59 = vmul.f32 %v939_v58, %v853_v46  ;;  %v1010_v11 = vmul.f32 %v1008_v5, %v941_v2 }
 0x430   :  { %v945_v47 = vmul.f32 %v935_v7, %v1909_v6  ;;  %v950_v9 = vmul.f32 %v938_v14, %v853_v46  ;;  %v971_v21 = vmul.f32 %v935_v7, %v888_v17  ;;  %v977_v28 = vmul.f32 %v940_v12, %v853_v46 }
 0x431   :  { %v974_v27 = vrot.slane %v972_v37, 4  ;;  %v993_v30 = vmul.f32 %v938_v14, %v891_v0  ;;  %v994_v13 = vmul.f32 %v940_v12, %v864_v3  ;;  %v944_v54 = vmul.f32 %v942_v62, %v932_v34 }
 0x432   :  { %v947_v31 = vrot.slane %v945_v47, 1  ;;  %v952_v19 = vrot.slane %v950_v9, 6  ;;  %v998_v4 = vrot.slane %v996_v41, 7  ;;  %v979_v35 = vrot.slane %v977_v28, 5 }
 0x433   :  { %v976_v49 = vadd.f32 %v974_v27, %v971_v21  ;;  %v995_v36 = vadd.f32 %v994_v13, %v993_v30  ;;  %v959_v38 = vmul.f32 %v957_v33, %v935_v7  ;;  %v966_v25 = vmul.f32 %v964_v52, %v938_v14  ;;  %v1310_v27 = vld [vmem:[#allocation2 + $0x30] sm:$0xff] }
 0x434   :  { %v949_v42 = vadd.f32 %v947_v31, %v944_v54  ;;  %v982_v43 = vmul.f32 %v942_v62, %v935_v7  ;;  %v985_v32 = vrot.slane %v983_v59, 4  ;;  %v955_v17 = vmul.f32 %v932_v34, %v1909_v6  ;;  %v1311_v54 = vld [vmem:[#allocation2 + $0x38] sm:$0xff] }
 0x435   :  { %v981_v10 = vadd.f32 %v979_v35, %v976_v49  ;;  %v961_v45 = vrot.slane %v959_v38, 1  ;;  %v988_v0 = vmul.f32 %v964_v52, %v940_v12  ;;  %v1000_v1 = vadd.f32 %v998_v4, %v995_v36 }
 0x436   :  { %v954_v46 = vadd.f32 %v952_v19, %v949_v42  ;;  %v987_v3 = vadd.f32 %v985_v32, %v982_v43  ;;  %v1003_v50 = vmul.f32 %v1001_v24, %v938_v14  ;;  %v968_v51 = vrot.slane %v966_v25, 6 }
 0x437   :  { %v963_v20 = vadd.f32 %v961_v45, %v955_v17  ;;  %v990_v63 = vrot.slane %v988_v0, 5  ;;  %v1006_v26 = vmul.f32 %v1004_v22, %v940_v12  ;;  %v1022_v55 = vrot.slane %v981_v10, 4 }
 0x438   :  { %v1016_v44 = vrot.slane %v954_v46, 3  ;;  %v1029_v23 = vrot.slane %v1000_v1, 1  ;;  %v1012_v39 = vrot.slane %v1010_v11, 7 }
 0x439   :  { %v970_v56 = vadd.f32 %v968_v51, %v963_v20  ;;  %v992_v33 = vadd.f32 %v990_v63, %v987_v3  ;;  %v1007_v40 = vadd.f32 %v1006_v26, %v1003_v50  ;;  %v1080_v20 = vmul.f32 10.0, %v1813_v61 }
 0x43a   :  { %1263 = vpush %v1016_v44  ;;  %v1086_v44 = vrot.slane %v1813_v61, 2 }
 0x43b   :  { %1265 = vpush %v1022_v55  ;;  %v1036_v6 = vrot.slane %v970_v56, 3  ;;  %v1042_v52 = vrot.slane %v992_v33, 4  ;;  %v1014_v58 = vadd.f32 %v1012_v39, %v1007_v40  ;;  %v1102_v39 = vsel %vm1101_vm14, %v1813_v61, 0.0 }
 0x43c   :  { %1267 = vpush %v1029_v23 }
 0x43d   :  { %1269 = vpush %v1036_v6  ;;  %v1049_v62 = vrot.slane %v1014_v58, 1 }
 0x43e   :  { %1271 = vpush %v1042_v52  ;;  %v1111_v52 = vsel %vm1110_vm15, %v1813_v61, 0.0 }
 0x43f   :  { %1273 = vpush %v1049_v62 }
 0x46b   :  { %s1264_s9 = spop %1263 }
 0x46c   :  { %v1018_v2 = vstv %s1264_s9  ;;  %s1266_s10 = spop %1265 }
 0x46d   :  { %v1020_v22 = vmul.f32 %v1018_v2, %v1850_v53  ;;  %v1024_v5 = vstv %s1266_s10  ;;  %s1268_s11 = spop %1267 }
 0x46e   :  { %v1026_v34 = vmul.f32 %v1024_v5, %v1855_v16  ;;  %s1270_s12 = spop %1269  ;;  %v1031_v41 = vstv %s1268_s11  ;;  %v1113_v5 = vrot.slane %v1111_v52, 2 }
 0x46f   :  { %v1038_v7 = vstv %s1270_s12  ;;  %s1272_s13 = spop %1271 }
 0x470   :  { %v1027_v14 = vadd.f32 %v1026_v34, %v1020_v22  ;;  %v1040_v12 = vmul.f32 %v1038_v7, %v1850_v53  ;;  %v1044_v37 = vstv %s1272_s13  ;;  %s1274_s14 = spop %1273 }
 0x471   :  { %v1046_v59 = vmul.f32 %v1044_v37, %v1855_v16  ;;  %v1051_v21 = vstv %s1274_s14  ;;  %v634_v16 = vmul.f32 %v1813_v61, %v1813_v61 }
 0x472   :  { %v1033_v24 = vadd.f32 %v1031_v41, %v1027_v14 }
 0x473   :  { %v1047_v47 = vadd.f32 %v1046_v59, %v1040_v12  ;;  %v636_v38 = vrot.slane %v634_v16, 1 }
 0x474   :  { %v1034_v9 = vadd.f32 %v1033_v24, %v747_v18 }
 0x475   :  { %v1053_v11 = vadd.f32 %v1051_v21, %v1047_v47  ;;  %v638_v25 = vadd.f32 %v636_v38, %v634_v16 }
 0x476   :  { %v1055_v28 = vsub.f32 %v1034_v9, %v1310_v27 }
 0x477   :  { %v1054_v30 = vadd.f32 %v1053_v11, %v753_v48  ;;  %vm641_vm6 = vcmp.eq.f32.partialorder %v638_v25, inf  ;;  %v644_v3 = vand.u32 2147483648, %v638_v25  ;;  %vm643_vm7 = vcmp.eq.f32.partialorder %v638_v25, 0.0 }
 0x478   :  { %v1056_v13 = vmul.f32 %v1055_v28, %v1055_v28 }
 0x479   :  { %v1057_v31 = vsub.f32 %v1054_v30, %v1311_v54 }
 0x47b   :  { %v1058_v19 = vmul.f32 %v1057_v31, %v1057_v31 }
 0x47d   :  { %v1059_v53 = vadd.f32 %v1058_v19, %v1056_v13 }
 0x47f   :  { %1306 = vrsqrt.f32 %v1059_v53  ;;  %vm1062_vm4 = vcmp.eq.f32.partialorder %v1059_v53, inf  ;;  %v1065_v35 = vand.u32 2147483648, %v1059_v53  ;;  %vm1064_vm5 = vcmp.eq.f32.partialorder %v1059_v53, 0.0 }
 0x480   :  { %1308 = vrsqrt.f32 %v638_v25 }
 0x48c   :  { %v1307_v4 = vpop.eup %1306 }
 0x48d   :  { %v1061_v49 = vmul.f32 %v1307_v4, %v1059_v53  ;;  %v1309_v0 = vpop.eup %1308 }
 0x48e   :  { %v640_v46 = vmul.f32 %v1309_v0, %v638_v25 }
 0x48f   :  { %v1063_v18 = vsel %vm1062_vm4, %v1059_v53, %v1061_v49 }
 0x490   :  { %v1066_v36 = vsel %vm1064_vm5, %v1065_v35, %v1063_v18  ;;  %v642_v1 = vsel %vm641_vm6, %v638_v25, %v640_v46 }
 0x491   :  { %v1067_v42 = vmul.f32 %v1819_v15, %v1066_v36  ;;  %v645_v50 = vsel %vm643_vm7, %v644_v3, %v642_v1  ;;  %v1082_v15 = vrot.slane %v1080_v20, 1 }
 0x492   :  { %v1090_v63 = vrot.slane %v645_v50, 3 }
 0x493   :  { %v1068_v48 = vrot.slane %v1067_v42, 4  ;;  %v1084_v51 = vadd.f32 %v1082_v15, %v1813_v61 }
 0x495   :  { %v1069_v43 = vadd.f32 %v1068_v48, %v1067_v42  ;;  %v1088_v55 = vadd.f32 %v1086_v44, %v1084_v51 }
 0x497   :  { %v1070_v32 = vrot.slane %v1069_v43, 2  ;;  %v1092_v33 = vadd.f32 %v1090_v63, %v1088_v55 }
 0x499   :  { %v1071_v10 = vadd.f32 %v1070_v32, %v1069_v43 }
 0x49b   :  { %v1072_v17 = vrot.slane %v1071_v10, 1 }
 0x49d   :  { %v1073_v45 = vadd.f32 %v1072_v17, %v1071_v10 }
 0x49f   :  { %1074 = vadd.xlane.f32.xlu1 %v1073_v45 }
 0x4b0   :  { %1118 = vperm.xlu1 %1283, %v645_v50  }
 0x528   :  { %v1075_v26 = vpop.xlane.xlu1 %1074 }
 0x529   :  { %v1078_v56 = vmul.f32 %v1839_v60, %v1075_v26  ;;  %v1105_v60 = vsel %vm1104_vm12, %v1813_v61, 0.0 }
 0x52a   :  { %v1107_v58 = vrot.slane %v1105_v60, 1 }
 0x52b   :  { %v1079_v23 = vsel %vm1077_vm11, %v1078_v56, 0.0 }
 0x52c   :  { %1129 = vperm.xlu1 %1283, %v1079_v23   ;;  %v1093_v40 = vadd.f32 %v1092_v33, %v1079_v23  ;;  %v1119_v57 = vpop.permute.xlu1 %1118 }
 0x52d   :  { %v1121_v2 = vsel %vm1116_vm0, %v1119_v57, 0.0 }
 0x52e   :  { %1097 = vperm.xlu0 %1282, %v1093_v40   ;;  %v1123_v34 = vrot.slane %v1121_v2, 3 }
 0x5a7   :  { %v1130_v7 = vpop.permute.xlu1 %1129 }
 0x5a8   :  { %v1132_v37 = vsel %vm1126_vm1, %v1130_v7, 0.0 }
 0x5a9   :  { %v1098_v29 = vpop.permute.xlu0 %1097 }
 0x5aa   :  { %v1100_v6 = vsel %vm1094_vm13, %v1098_v29, 0.0 }
 0x5ab   :  { %v1103_v62 = vadd.f32 %v1102_v39, %v1100_v6 }
 0x5ad   :  { %v1109_v22 = vadd.f32 %v1107_v58, %v1103_v62 }
 0x5af   :  { %v1115_v14 = vadd.f32 %v1113_v5, %v1109_v22 }
 0x5b1   :  { %v1125_v12 = vadd.f32 %v1123_v34, %v1115_v14 }
 0x5b3   :  { %v1133_v41 = vadd.f32 %v1132_v37, %v1125_v12 }
 0x5b5   :  { %1134 = vst [vmem:[#allocation7] sm:$0x1] %v1133_v41 }
 0x5b6   :  { %1355 = shalt.err (!%p1352_p0)
}
 0x5b7   :  { %1144 = dma.vmem_to_hbm [thread:$0]  %s1142_s16, 16, %s1975_s2, [#allocation4]  }
 0x5b8   :  { %1368 = dma.done.wait [#allocation4], 16  }
 0x5b9   :  { %1369 = vsyncadd [#allocation4], 4294967280 }
 0x5ba   :  { %1148 = vsyncpa [#allocation3], 1 }
 0x5bb   :  { %1149 = vsyncpa [#allocation4], 1 }
 0x5bc   :  { %1150 = vsyncpa [#allocation5], 1 }

</bundles_post_ra>
